<compile_context>
chip_gen: v6e
topology: v6e:2x2x1
jax: 0.10.0
libtpu: 0.0.40
codegen_flags: <defaults>
</compile_context>

<pallas_src>
import math
import functools

import jax
import jax.numpy as jnp
from jax.experimental import pallas as pl
from jax.experimental.pallas import tpu as pltpu

NEG = float(jnp.finfo(jnp.float32).min)
LN_EPS = 1e-5


# ----------------------------- tile selection -------------------------------

def _row_tile(dim, cap):
    """Largest t <= cap dividing dim with t % 8 == 0 (or t == dim)."""
    cap = max(1, min(cap, dim))
    for t in range(cap, 0, -1):
        if dim % t == 0 and (t % 8 == 0 or t == dim):
            return t
    return dim


def _lane_tile(dim, cap):
    """Largest t <= cap dividing dim with t % 128 == 0 (or t == dim)."""
    cap = max(1, min(cap, dim))
    for t in range(cap, 0, -1):
        if dim % t == 0 and (t % 128 == 0 or t == dim):
            return t
    return dim


def _m_tile(m):
    # Cap so M splits into >=2 blocks when possible -> both TCs get work on v7x.
    return _row_tile(m, cap=min(128, max(8, m // 2)))


# ----------------------------- Pallas kernels -------------------------------

def _matmul_bias_kernel(x_ref, w_ref, b_ref, o_ref, acc_ref):
    """Tiled x @ W + b with f32 accumulator; bf16 MXU operands."""
    @pl.when(pl.program_id(2) == 0)
    def _():
        acc_ref[...] = jnp.zeros_like(acc_ref)

    acc_ref[...] += jnp.dot(x_ref[...].astype(jnp.bfloat16),
                            w_ref[...].astype(jnp.bfloat16),
                            preferred_element_type=jnp.float32)

    @pl.when(pl.program_id(2) == pl.num_programs(2) - 1)
    def _():
        o_ref[...] = acc_ref[...] + b_ref[...]


def matmul_bias(x2d, w, b):
    M, K = x2d.shape
    N = w.shape[1]
    tm = _m_tile(M)
    tn = _lane_tile(N, cap=256)
    tk = _lane_tile(K, cap=512)
    return pl.pallas_call(
        _matmul_bias_kernel,
        out_shape=jax.ShapeDtypeStruct((M, N), jnp.float32),
        grid=(M // tm, N // tn, K // tk),
        in_specs=[
            pl.BlockSpec((tm, tk), lambda i, j, k: (i, k)),
            pl.BlockSpec((tk, tn), lambda i, j, k: (k, j)),
            pl.BlockSpec((1, tn), lambda i, j, k: (0, j)),
        ],
        out_specs=pl.BlockSpec((tm, tn), lambda i, j, k: (i, j)),
        scratch_shapes=[pltpu.VMEM((tm, tn), jnp.float32)],
        compiler_params=pltpu.CompilerParams(
            dimension_semantics=("parallel", "parallel", "arbitrary")),
    )(x2d, w, b.reshape(1, N))


def _flash_attn_kernel(*refs, scale, has_mask):
    """Flash-style attention for one head: online softmax over kv tiles.

    Causal mask is generated in-kernel (iota compare); the optional user mask is
    an additive [tq, tk] block. Scale is folded into q (a [tq, Dh] multiply, not
    the [tq, tk] scores). MXU operands are bf16, accumulation f32.
    """
    if has_mask:
        q_ref, k_ref, v_ref, um_ref, o_ref, m_ref, l_ref, acc_ref = refs
    else:
        q_ref, k_ref, v_ref, o_ref, m_ref, l_ref, acc_ref = refs
        um_ref = None

    ki = pl.program_id(2)

    @pl.when(ki == 0)
    def _():
        m_ref[...] = jnp.full_like(m_ref, -jnp.inf)
        l_ref[...] = jnp.zeros_like(l_ref)
        acc_ref[...] = jnp.zeros_like(acc_ref)

    q = q_ref[...] * scale                                   # [tq, Dh]
    # QK^T: contract last axes directly (no explicit transpose copy).
    s = jax.lax.dot_general(
        q.astype(jnp.bfloat16), k_ref[...].astype(jnp.bfloat16),
        dimension_numbers=(((1,), (1,)), ((), ())),
        preferred_element_type=jnp.float32)                  # [tq, tk]

    if has_mask:
        s = s + um_ref[...]

    tq, tk = s.shape
    q_pos = pl.program_id(1) * tq + jax.lax.broadcasted_iota(jnp.int32, (tq, tk), 0)
    k_pos = ki * tk + jax.lax.broadcasted_iota(jnp.int32, (tq, tk), 1)
    s = jnp.where(q_pos >= k_pos, s, NEG)                    # in-kernel causal mask

    m_prev = m_ref[...]
    m_new = jnp.maximum(m_prev, jnp.max(s, axis=-1, keepdims=True))
    alpha = jnp.exp(m_prev - m_new)
    p = jnp.exp(s - m_new)
    l_ref[...] = alpha * l_ref[...] + jnp.sum(p, axis=-1, keepdims=True)
    acc_ref[...] = alpha * acc_ref[...] + jnp.dot(
        p.astype(jnp.bfloat16), v_ref[...].astype(jnp.bfloat16),
        preferred_element_type=jnp.float32)
    m_ref[...] = m_new

    @pl.when(ki == pl.num_programs(2) - 1)
    def _():
        o_ref[...] = (acc_ref[...] *
                      pl.reciprocal(l_ref[...], approx=True)).astype(o_ref.dtype)


def flash_attention(q, k, v, user_mask, head_dim):
    """q, k, v: [B*N, L, Dh]; optional user_mask: additive [L, L]."""
    BN, L, Dh = q.shape
    scale = 1.0 / math.sqrt(head_dim)
    tq = _row_tile(L, cap=128)
    tk = _row_tile(L, cap=128)
    has_mask = user_mask is not None

    in_specs = [
        pl.BlockSpec((None, tq, Dh), lambda h, qi, ki: (h, qi, 0)),
        pl.BlockSpec((None, tk, Dh), lambda h, qi, ki: (h, ki, 0)),
        pl.BlockSpec((None, tk, Dh), lambda h, qi, ki: (h, ki, 0)),
    ]
    args = [q, k, v]
    if has_mask:
        in_specs.append(pl.BlockSpec((tq, tk), lambda h, qi, ki: (qi, ki)))
        args.append(user_mask)

    return pl.pallas_call(
        functools.partial(_flash_attn_kernel, scale=scale, has_mask=has_mask),
        out_shape=jax.ShapeDtypeStruct((BN, L, Dh), jnp.float32),
        grid=(BN, L // tq, L // tk),
        in_specs=in_specs,
        out_specs=pl.BlockSpec((None, tq, Dh), lambda h, qi, ki: (h, qi, 0)),
        scratch_shapes=[
            pltpu.VMEM((tq, 1), jnp.float32),    # running max m
            pltpu.VMEM((tq, 1), jnp.float32),    # running denom l
            pltpu.VMEM((tq, Dh), jnp.float32),   # output accumulator
        ],
        compiler_params=pltpu.CompilerParams(
            dimension_semantics=("parallel", "parallel", "arbitrary")),
    )(*args)


def _attn_out_kernel(a_ref, res_ref, w_ref, b_ref, g_ref, beta_ref, o_ref, *, eps):
    """Fused: swish(attn) @ Wout + bout, + residual, LayerNorm."""
    a = a_ref[...]
    a = a * jax.nn.sigmoid(a)                                # swish (f32 epilogue)
    y = jnp.dot(a.astype(jnp.bfloat16), w_ref[...].astype(jnp.bfloat16),
                preferred_element_type=jnp.float32) + b_ref[...]
    r = y + res_ref[...]
    mu = jnp.mean(r, axis=-1, keepdims=True)
    var = jnp.mean((r - mu) ** 2, axis=-1, keepdims=True)
    o_ref[...] = (r - mu) * jax.lax.rsqrt(var + eps) * g_ref[...] + beta_ref[...]


def attn_epilogue(attn2d, res2d, w, b, g, beta):
    # TODO(synk): at large D, tile Wout over N/K instead of one full-weight block.
    M, D = attn2d.shape
    tm = _m_tile(M)
    row = pl.BlockSpec((tm, D), lambda i: (i, 0))
    vec = pl.BlockSpec((1, D), lambda i: (0, 0))
    return pl.pallas_call(
        functools.partial(_attn_out_kernel, eps=LN_EPS),
        out_shape=jax.ShapeDtypeStruct((M, D), jnp.float32),
        grid=(M // tm,),
        in_specs=[row, row, pl.BlockSpec((D, D), lambda i: (0, 0)), vec, vec, vec],
        out_specs=row,
        compiler_params=pltpu.CompilerParams(dimension_semantics=("parallel",)),
    )(attn2d, res2d, w, b.reshape(1, D), g.reshape(1, D), beta.reshape(1, D))


def _ffn_kernel(x_ref, w1_ref, b1_ref, w2_ref, b2_ref, g_ref, beta_ref, o_ref, *, eps):
    """Fused FFN: (x @ W1 + b1) -> swish -> @ W2 + b2, + residual, LayerNorm.

    The [tm, 4D] intermediate lives only in VMEM (never written to HBM).
    """
    x = x_ref[...]
    h = jnp.dot(x.astype(jnp.bfloat16), w1_ref[...].astype(jnp.bfloat16),
                preferred_element_type=jnp.float32) + b1_ref[...]
    h = h * jax.nn.sigmoid(h)                                # swish (f32 epilogue)
    y = jnp.dot(h.astype(jnp.bfloat16), w2_ref[...].astype(jnp.bfloat16),
                preferred_element_type=jnp.float32) + b2_ref[...]
    r = y + x                                                # residual
    mu = jnp.mean(r, axis=-1, keepdims=True)
    var = jnp.mean((r - mu) ** 2, axis=-1, keepdims=True)
    o_ref[...] = (r - mu) * jax.lax.rsqrt(var + eps) * g_ref[...] + beta_ref[...]


def ffn_block(x2d, w1, b1, w2, b2, g, beta):
    # TODO(synk): at large D, tile the 4D hidden / contraction dims instead of
    # loading W1/W2 as full blocks per row tile.
    M, D = x2d.shape
    H = w1.shape[1]
    tm = _m_tile(M)
    row = pl.BlockSpec((tm, D), lambda i: (i, 0))
    vecD = pl.BlockSpec((1, D), lambda i: (0, 0))
    return pl.pallas_call(
        functools.partial(_ffn_kernel, eps=LN_EPS),
        out_shape=jax.ShapeDtypeStruct((M, D), jnp.float32),
        grid=(M // tm,),
        in_specs=[
            row,
            pl.BlockSpec((D, H), lambda i: (0, 0)),
            pl.BlockSpec((1, H), lambda i: (0, 0)),
            pl.BlockSpec((H, D), lambda i: (0, 0)),
            vecD, vecD, vecD,
        ],
        out_specs=row,
        compiler_params=pltpu.CompilerParams(dimension_semantics=("parallel",)),
    )(x2d, w1, b1.reshape(1, H), w2, b2.reshape(1, D), g.reshape(1, D), beta.reshape(1, D))


# ------------------------------- RoPE helpers --------------------------------

def _rope_angles_1d(dim, end, factor=1.0, base=10000.0):
    inv = 1.0 / (base ** (jnp.arange(0, dim, 2, dtype=jnp.float32)[: dim // 2] / dim))
    t = jnp.arange(end, dtype=jnp.float32) / factor
    return jnp.outer(t, inv)                                  # [end, dim//2]


def _rope_angles_2d(dim, h, w, x_factor=1.0, y_factor=1.0, base=10000.0):
    # TODO(synk): exact 2D-RoPE layout of the reference precompute_freqs_cis_2d is
    # not in the given source; using split-head_dim (x half | y half), row-major.
    ax = _rope_angles_1d(dim // 2, w, x_factor, base)         # [w, dim//4]
    ay = _rope_angles_1d(dim // 2, h, y_factor, base)         # [h, dim//4]
    ax_full = jnp.tile(ax[None, :, :], (h, 1, 1)).reshape(h * w, -1)
    ay_full = jnp.tile(ay[:, None, :], (1, w, 1)).reshape(h * w, -1)
    return jnp.concatenate([ax_full, ay_full], axis=-1)       # [h*w, dim//2]


def build_rope_tables(head_dim, l1d, num_t):
    """Combined spatial(2D)+temporal RoPE table for sequence order (t, l).

    Successive rotations compose additively, so applying spatial then temporal
    RoPE equals a single rotation by angle_spatial(l) + angle_temporal(t).
    """
    spatial = _rope_angles_2d(head_dim, l1d, l1d)             # [Ls, Dh//2]
    temporal = _rope_angles_1d(head_dim, num_t)               # [T,  Dh//2]
    ang = temporal[:, None, :] + spatial[None, :, :]          # [T, Ls, Dh//2]
    ang = ang.reshape(num_t * spatial.shape[0], -1)           # [L, Dh//2]
    return jnp.cos(ang), jnp.sin(ang)


def apply_rope(x, cos, sin):
    """x: [B, L, N, Dh]; cos/sin: [L, Dh//2]; interleaved (view_as_complex) pairing."""
    x1 = x[..., 0::2]
    x2 = x[..., 1::2]
    c = cos[None, :, None, :]
    s = sin[None, :, None, :]
    y1 = x1 * c - x2 * s
    y2 = x1 * s + x2 * c
    return jnp.stack([y1, y2], axis=-1).reshape(x.shape)


# -------------------------------- model glue ---------------------------------

def expand_user_mask(attention_mask):
    """torch _expand_mask: additive mask, 0 where allowed, float32.min where masked."""
    inv = 1.0 - attention_mask.astype(jnp.float32)
    return jnp.where(inv != 0.0, NEG, 0.0).astype(jnp.float32)


def encoder_layer(x, p, user_mask, cfg, rope_cos, rope_sin):
    B, L, D = x.shape
    N = cfg['num_heads']
    Dh = D // N
    x2d = x.reshape(B * L, D)

    # ---- MultiHeadAttention ----
    qkv = matmul_bias(x2d, p['Wqkv'], p['bqkv'])              # [B*L, 3D]  (tiled kernel)
    qkv = qkv.reshape(B, L, N, 3 * Dh)                        # 'b l (n h)' with h = 3*Dh
    q, k, v = jnp.split(qkv, 3, axis=-1)                      # each [B, L, N, Dh]

    # fused spatial+temporal RoPE (single application, per-head broadcast)
    q = apply_rope(q, rope_cos, rope_sin)
    k = apply_rope(k, rope_cos, rope_sin)

    qh = q.transpose(0, 2, 1, 3).reshape(B * N, L, Dh)
    kh = k.transpose(0, 2, 1, 3).reshape(B * N, L, Dh)
    vh = v.transpose(0, 2, 1, 3).reshape(B * N, L, Dh)

    attn = flash_attention(qh, kh, vh, user_mask, Dh)         # [B*N, L, Dh]
    attn = attn.reshape(B, N, L, Dh).transpose(0, 2, 1, 3).reshape(B * L, D)

    # swish -> out_linear -> (+residual, dropout p=0 is identity) -> LayerNorm (fused)
    x2d = attn_epilogue(attn, x2d, p['Wout'], p['bout'], p['g1'], p['beta1'])

    # FFN (Linear -> swish -> Linear) -> +residual -> LayerNorm (fused)
    x2d = ffn_block(x2d, p['W1'], p['b1'], p['W2'], p['b2'], p['g2'], p['beta2'])
    return x2d.reshape(B, L, D)


def init_params(key, D, num_layers):
    params = []
    scale = 0.02
    for layer in range(num_layers):
        ks = jax.random.split(jax.random.fold_in(key, layer), 4)
        params.append(dict(
            Wqkv=(jax.random.normal(ks[0], (D, 3 * D), jnp.float32) * scale),
            bqkv=jnp.zeros((3 * D,), jnp.float32),
            Wout=(jax.random.normal(ks[1], (D, D), jnp.float32) * scale),
            bout=jnp.zeros((D,), jnp.float32),
            g1=jnp.ones((D,), jnp.float32), beta1=jnp.zeros((D,), jnp.float32),
            g2=jnp.ones((D,), jnp.float32), beta2=jnp.zeros((D,), jnp.float32),
            W1=(jax.random.normal(ks[2], (D, 4 * D), jnp.float32) * scale),
            b1=jnp.zeros((4 * D,), jnp.float32),
            W2=(jax.random.normal(ks[3], (4 * D, D), jnp.float32) * scale),
            b2=jnp.zeros((D,), jnp.float32),
        ))
    return params


def transformer_forward(x, attention_mask, params, cfg, rope_cos, rope_sin):
    user_mask = None if attention_mask is None else expand_user_mask(attention_mask)
    for p in params:
        x = encoder_layer(x, p, user_mask, cfg, rope_cos, rope_sin)
    return x


# ----------------------------------- main ------------------------------------

if __name__ == "__main__":
    cfg = dict(hidden_dim=32, num_heads=4, dropout_rate=0.0,
               num_hidden_layers=2, num_t=2,
               train_img_size=8, eval_img_size=8, patch_size=2)

    B = 2
    D = cfg['hidden_dim']
    Dh = D // cfg['num_heads']
    L1d = cfg['train_img_size'] // cfg['patch_size']   # 4
    Ls = L1d * L1d                                     # 16 spatial tokens (2D RoPE branch)
    L = Ls * cfg['num_t']                              # 32 total sequence length

    key = jax.random.PRNGKey(0)
    kx, kp = jax.random.split(key)
    x = jax.random.normal(kx, (B, L, D), dtype=jnp.float32)
    attention_mask = jnp.ones((L, L), dtype=jnp.float32)   # [seq, seq], like the torch ref

    params = init_params(kp, D, cfg['num_hidden_layers'])
    rope_cos, rope_sin = build_rope_tables(Dh, L1d, cfg['num_t'])

    fwd = jax.jit(lambda xx, am, pp, c, s: transformer_forward(xx, am, pp, cfg, c, s))
    out = fwd(x, attention_mask, params, rope_cos, rope_sin)
    out = jax.block_until_ready(out)
    assert out.shape == (B, L, D) and out.dtype == jnp.float32
    print("KERNEL_OK")
</pallas_src>

<mosaic_0001>
module attributes {stable_mosaic.version = 11 : i64} {
  func.func @_matmul_bias_kernel(%arg0: i32, %arg1: i32, %arg2: i32, %arg3: memref<32x32xf32, #tpu.memory_space<vmem>>, %arg4: memref<32x96xf32, #tpu.memory_space<vmem>>, %arg5: memref<1x96xf32, #tpu.memory_space<vmem>>, %arg6: memref<32x96xf32, #tpu.memory_space<vmem>>, %arg7: memref<32x96xf32, #tpu.memory_space<vmem>>) attributes {dimension_semantics = [#tpu.dimension_semantics<parallel>, #tpu.dimension_semantics<parallel>, #tpu.dimension_semantics<arbitrary>], iteration_bounds = array<i64: 2, 1, 1>, scalar_prefetch = 0 : i64, scratch_operands = 1 : i64, tpu.core_type = #tpu.core_type<tc>, window_params = [{transform_indices = @transform_0, window_bounds = array<i64: 32, 32>}, {transform_indices = @transform_1, window_bounds = array<i64: 32, 96>}, {transform_indices = @transform_2, window_bounds = array<i64: 1, 96>}, {transform_indices = @transform_3, window_bounds = array<i64: 32, 96>}]} {
    %c0_i32 = arith.constant 0 : i32
    %0 = arith.cmpi eq, %arg2, %c0_i32 : i32
    %1 = arith.extui %0 : i1 to i32
    %c0_i32_0 = arith.constant 0 : i32
    %2 = arith.cmpi ne, %1, %c0_i32_0 : i32
    scf.if %2 {
      %cst_10 = arith.constant 0.000000e+00 : f32
      %14 = vector.broadcast %cst_10 : f32 to vector<32x96xf32>
      %c0_11 = arith.constant 0 : index
      %c0_12 = arith.constant 0 : index
      %15 = vector.load %arg7[%c0_11, %c0_12] : memref<32x96xf32, #tpu.memory_space<vmem>>, vector<32x96xf32>
      tpu.vector_store %arg7[%c0_11, %c0_12], %14 {strides = array<i32>} : memref<32x96xf32, #tpu.memory_space<vmem>>, vector<32x96xf32>,
    } else {
    }
    %c0 = arith.constant 0 : index
    %c0_1 = arith.constant 0 : index
    %3 = vector.load %arg7[%c0, %c0_1] : memref<32x96xf32, #tpu.memory_space<vmem>>, vector<32x96xf32>
    %c0_2 = arith.constant 0 : index
    %c0_3 = arith.constant 0 : index
    %4 = vector.load %arg3[%c0_2, %c0_3] : memref<32x32xf32, #tpu.memory_space<vmem>>, vector<32x32xf32>
    %5 = arith.truncf %4 : vector<32x32xf32> to vector<32x32xbf16>
    %c0_4 = arith.constant 0 : index
    %c0_5 = arith.constant 0 : index
    %6 = vector.load %arg4[%c0_4, %c0_5] : memref<32x96xf32, #tpu.memory_space<vmem>>, vector<32x96xf32>
    %7 = arith.truncf %6 : vector<32x96xf32> to vector<32x96xbf16>
    %cst = arith.constant dense<0.000000e+00> : vector<32x96xf32>
    %8 = tpu.matmul %5, %7, %cst {dimension_numbers = #tpu.dot_dimension_numbers<[1], [0], [0], [1], [0, 0, 1, 1], [], []>} : vector<32x32xbf16>, vector<32x96xbf16>, vector<32x96xf32> -> vector<32x96xf32>
    %9 = arith.addf %3, %8 : vector<32x96xf32>
    %c0_6 = arith.constant 0 : index
    %c0_7 = arith.constant 0 : index
    %10 = vector.load %arg7[%c0_6, %c0_7] : memref<32x96xf32, #tpu.memory_space<vmem>>, vector<32x96xf32>
    tpu.vector_store %arg7[%c0_6, %c0_7], %9 {strides = array<i32>} : memref<32x96xf32, #tpu.memory_space<vmem>>, vector<32x96xf32>,
    %c0_i32_8 = arith.constant 0 : i32
    %11 = arith.cmpi eq, %arg2, %c0_i32_8 : i32
    %12 = arith.extui %11 : i1 to i32
    %c0_i32_9 = arith.constant 0 : i32
    %13 = arith.cmpi ne, %12, %c0_i32_9 : i32
    scf.if %13 {
      %c0_10 = arith.constant 0 : index
      %c0_11 = arith.constant 0 : index
      %14 = vector.load %arg7[%c0_10, %c0_11] : memref<32x96xf32, #tpu.memory_space<vmem>>, vector<32x96xf32>
      %c0_12 = arith.constant 0 : index
      %c0_13 = arith.constant 0 : index
      %15 = vector.load %arg5[%c0_12, %c0_13] : memref<1x96xf32, #tpu.memory_space<vmem>>, vector<1x96xf32>
      %16 = vector.broadcast %15 : vector<1x96xf32> to vector<32x96xf32>
      %17 = arith.addf %14, %16 : vector<32x96xf32>
      %c0_14 = arith.constant 0 : index
      %c0_15 = arith.constant 0 : index
      %18 = vector.load %arg6[%c0_14, %c0_15] : memref<32x96xf32, #tpu.memory_space<vmem>>, vector<32x96xf32>
      tpu.vector_store %arg6[%c0_14, %c0_15], %17 {strides = array<i32>} : memref<32x96xf32, #tpu.memory_space<vmem>>, vector<32x96xf32>,
    } else {
    }
    return
  }
  func.func @transform_0(%arg0: i32, %arg1: i32, %arg2: i32) -> (i32, i32) {
    %c0_i32 = arith.constant 0 : i32
    return %arg0, %arg2 : i32, i32
  }
  func.func @transform_1(%arg0: i32, %arg1: i32, %arg2: i32) -> (i32, i32) {
    %c0_i32 = arith.constant 0 : i32
    return %arg2, %arg1 : i32, i32
  }
  func.func @transform_2(%arg0: i32, %arg1: i32, %arg2: i32) -> (i32, i32) {
    %c0_i32 = arith.constant 0 : i32
    %c0_i32_0 = arith.constant 0 : i32
    return %c0_i32, %arg1 : i32, i32
  }
  func.func @transform_3(%arg0: i32, %arg1: i32, %arg2: i32) -> (i32, i32) {
    %c0_i32 = arith.constant 0 : i32
    return %arg0, %arg1 : i32, i32
  }
}

module attributes {stable_mosaic.version = 11 : i64} {
  func.func @_flash_attn_kernel(%arg0: i32, %arg1: i32, %arg2: i32, %arg3: memref<1x32x8xf32, #tpu.memory_space<vmem>>, %arg4: memref<1x32x8xf32, #tpu.memory_space<vmem>>, %arg5: memref<1x32x8xf32, #tpu.memory_space<vmem>>, %arg6: memref<32x32xf32, #tpu.memory_space<vmem>>, %arg7: memref<1x32x8xf32, #tpu.memory_space<vmem>>, %arg8: memref<32x1xf32, #tpu.memory_space<vmem>>, %arg9: memref<32x1xf32, #tpu.memory_space<vmem>>, %arg10: memref<32x8xf32, #tpu.memory_space<vmem>>) attributes {dimension_semantics = [#tpu.dimension_semantics<parallel>, #tpu.dimension_semantics<parallel>, #tpu.dimension_semantics<arbitrary>], iteration_bounds = array<i64: 8, 1, 1>, scalar_prefetch = 0 : i64, scratch_operands = 3 : i64, tpu.core_type = #tpu.core_type<tc>, window_params = [{transform_indices = @transform_0, window_bounds = array<i64: 1, 32, 8>}, {transform_indices = @transform_1, window_bounds = array<i64: 1, 32, 8>}, {transform_indices = @transform_2, window_bounds = array<i64: 1, 32, 8>}, {transform_indices = @transform_3, window_bounds = array<i64: 32, 32>}, {transform_indices = @transform_4, window_bounds = array<i64: 1, 32, 8>}]} {
    %c0_i32 = arith.constant 0 : i32
    %0 = arith.cmpi eq, %arg2, %c0_i32 : i32
    %1 = arith.extui %0 : i1 to i32
    %c0_i32_0 = arith.constant 0 : i32
    %2 = arith.cmpi ne, %1, %c0_i32_0 : i32
    scf.if %2 {
      %cst_31 = arith.constant 0xFF800000 : f32
      %54 = vector.broadcast %cst_31 : f32 to vector<32x1xf32>
      %c0_32 = arith.constant 0 : index
      %c0_33 = arith.constant 0 : index
      %55 = vector.load %arg8[%c0_32, %c0_33] : memref<32x1xf32, #tpu.memory_space<vmem>>, vector<32x1xf32>
      tpu.vector_store %arg8[%c0_32, %c0_33], %54 {strides = array<i32>} : memref<32x1xf32, #tpu.memory_space<vmem>>, vector<32x1xf32>,
      %cst_34 = arith.constant 0.000000e+00 : f32
      %56 = vector.broadcast %cst_34 : f32 to vector<32x1xf32>
      %c0_35 = arith.constant 0 : index
      %c0_36 = arith.constant 0 : index
      %57 = vector.load %arg9[%c0_35, %c0_36] : memref<32x1xf32, #tpu.memory_space<vmem>>, vector<32x1xf32>
      tpu.vector_store %arg9[%c0_35, %c0_36], %56 {strides = array<i32>} : memref<32x1xf32, #tpu.memory_space<vmem>>, vector<32x1xf32>,
      %cst_37 = arith.constant 0.000000e+00 : f32
      %58 = vector.broadcast %cst_37 : f32 to vector<32x8xf32>
      %c0_38 = arith.constant 0 : index
      %c0_39 = arith.constant 0 : index
      %59 = vector.load %arg10[%c0_38, %c0_39] : memref<32x8xf32, #tpu.memory_space<vmem>>, vector<32x8xf32>
      tpu.vector_store %arg10[%c0_38, %c0_39], %58 {strides = array<i32>} : memref<32x8xf32, #tpu.memory_space<vmem>>, vector<32x8xf32>,
    } else {
    }
    %c0 = arith.constant 0 : index
    %c0_1 = arith.constant 0 : index
    %c0_2 = arith.constant 0 : index
    %3 = vector.load %arg3[%c0, %c0_1, %c0_2] : memref<1x32x8xf32, #tpu.memory_space<vmem>>, vector<1x32x8xf32>
    %4 = vector.shape_cast %3 : vector<1x32x8xf32> to vector<32x8xf32>
    %cst = arith.constant 0.353553385 : f32
    %5 = vector.broadcast %cst : f32 to vector<32x8xf32>
    %6 = arith.mulf %4, %5 : vector<32x8xf32>
    %7 = arith.truncf %6 : vector<32x8xf32> to vector<32x8xbf16>
    %c0_3 = arith.constant 0 : index
    %c0_4 = arith.constant 0 : index
    %c0_5 = arith.constant 0 : index
    %8 = vector.load %arg4[%c0_3, %c0_4, %c0_5] : memref<1x32x8xf32, #tpu.memory_space<vmem>>, vector<1x32x8xf32>
    %9 = vector.shape_cast %8 : vector<1x32x8xf32> to vector<32x8xf32>
    %10 = arith.truncf %9 : vector<32x8xf32> to vector<32x8xbf16>
    %cst_6 = arith.constant dense<0.000000e+00> : vector<32x32xf32>
    %11 = tpu.matmul %7, %10, %cst_6 {dimension_numbers = #tpu.dot_dimension_numbers<[1], [1], [0], [0], [0, 0, 1, 0], [], []>} : vector<32x8xbf16>, vector<32x8xbf16>, vector<32x32xf32> -> vector<32x32xf32>
    %c0_7 = arith.constant 0 : index
    %c0_8 = arith.constant 0 : index
    %12 = vector.load %arg6[%c0_7, %c0_8] : memref<32x32xf32, #tpu.memory_space<vmem>>, vector<32x32xf32>
    %13 = arith.addf %11, %12 : vector<32x32xf32>
    %c32_i32 = arith.constant 32 : i32
    %14 = arith.muli %arg1, %c32_i32 : i32
    %15 = tpu.iota {dimensions = array<i32: 0>} : vector<32x32xi32>
    %16 = vector.broadcast %14 : i32 to vector<32x32xi32>
    %17 = arith.addi %16, %15 : vector<32x32xi32>
    %c32_i32_9 = arith.constant 32 : i32
    %18 = arith.muli %arg2, %c32_i32_9 : i32
    %19 = tpu.iota {dimensions = array<i32: 1>} : vector<32x32xi32>
    %20 = vector.broadcast %18 : i32 to vector<32x32xi32>
    %21 = arith.addi %20, %19 : vector<32x32xi32>
    %22 = arith.cmpi sge, %17, %21 : vector<32x32xi32>
    %cst_10 = arith.constant -3.40282347E+38 : f32
    %23 = vector.broadcast %cst_10 : f32 to vector<32x32xf32>
    %24 = arith.select %22, %13, %23 : vector<32x32xi1>, vector<32x32xf32>
    %c0_11 = arith.constant 0 : index
    %c0_12 = arith.constant 0 : index
    %25 = vector.load %arg8[%c0_11, %c0_12] : memref<32x1xf32, #tpu.memory_space<vmem>>, vector<32x1xf32>
    %cst_13 = arith.constant dense<0xFF800000> : vector<32xf32>
    %26 = vector.multi_reduction <maximumf>, %24, %cst_13 [1] : vector<32x32xf32> to vector<32xf32>
    %27 = vector.shape_cast %26 : vector<32xf32> to vector<32x1xf32>
    %28 = arith.maximumf %25, %27 : vector<32x1xf32>
    %29 = arith.subf %25, %28 : vector<32x1xf32>
    %30 = math.exp %29 : vector<32x1xf32>
    %31 = vector.broadcast %28 : vector<32x1xf32> to vector<32x32xf32>
    %32 = arith.subf %24, %31 : vector<32x32xf32>
    %33 = math.exp %32 : vector<32x32xf32>
    %c0_14 = arith.constant 0 : index
    %c0_15 = arith.constant 0 : index
    %34 = vector.load %arg9[%c0_14, %c0_15] : memref<32x1xf32, #tpu.memory_space<vmem>>, vector<32x1xf32>
    %35 = arith.mulf %30, %34 : vector<32x1xf32>
    %cst_16 = arith.constant dense<0.000000e+00> : vector<32xf32>
    %36 = vector.multi_reduction <add>, %33, %cst_16 [1] : vector<32x32xf32> to vector<32xf32>
    %37 = vector.shape_cast %36 : vector<32xf32> to vector<32x1xf32>
    %38 = arith.addf %35, %37 : vector<32x1xf32>
    %c0_17 = arith.constant 0 : index
    %c0_18 = arith.constant 0 : index
    %39 = vector.load %arg9[%c0_17, %c0_18] : memref<32x1xf32, #tpu.memory_space<vmem>>, vector<32x1xf32>
    tpu.vector_store %arg9[%c0_17, %c0_18], %38 {strides = array<i32>} : memref<32x1xf32, #tpu.memory_space<vmem>>, vector<32x1xf32>,
    %c0_19 = arith.constant 0 : index
    %c0_20 = arith.constant 0 : index
    %40 = vector.load %arg10[%c0_19, %c0_20] : memref<32x8xf32, #tpu.memory_space<vmem>>, vector<32x8xf32>
    %41 = vector.broadcast %30 : vector<32x1xf32> to vector<32x8xf32>
    %42 = arith.mulf %41, %40 : vector<32x8xf32>
    %43 = arith.truncf %33 : vector<32x32xf32> to vector<32x32xbf16>
    %c0_21 = arith.constant 0 : index
    %c0_22 = arith.constant 0 : index
    %c0_23 = arith.constant 0 : index
    %44 = vector.load %arg5[%c0_21, %c0_22, %c0_23] : memref<1x32x8xf32, #tpu.memory_space<vmem>>, vector<1x32x8xf32>
    %45 = vector.shape_cast %44 : vector<1x32x8xf32> to vector<32x8xf32>
    %46 = arith.truncf %45 : vector<32x8xf32> to vector<32x8xbf16>
    %cst_24 = arith.constant dense<0.000000e+00> : vector<32x8xf32>
    %47 = tpu.matmul %43, %46, %cst_24 {dimension_numbers = #tpu.dot_dimension_numbers<[1], [0], [0], [1], [0, 0, 1, 1], [], []>} : vector<32x32xbf16>, vector<32x8xbf16>, vector<32x8xf32> -> vector<32x8xf32>
    %48 = arith.addf %42, %47 : vector<32x8xf32>
    %c0_25 = arith.constant 0 : index
    %c0_26 = arith.constant 0 : index
    %49 = vector.load %arg10[%c0_25, %c0_26] : memref<32x8xf32, #tpu.memory_space<vmem>>, vector<32x8xf32>
    tpu.vector_store %arg10[%c0_25, %c0_26], %48 {strides = array<i32>} : memref<32x8xf32, #tpu.memory_space<vmem>>, vector<32x8xf32>,
    %c0_27 = arith.constant 0 : index
    %c0_28 = arith.constant 0 : index
    %50 = vector.load %arg8[%c0_27, %c0_28] : memref<32x1xf32, #tpu.memory_space<vmem>>, vector<32x1xf32>
    tpu.vector_store %arg8[%c0_27, %c0_28], %28 {strides = array<i32>} : memref<32x1xf32, #tpu.memory_space<vmem>>, vector<32x1xf32>,
    %c0_i32_29 = arith.constant 0 : i32
    %51 = arith.cmpi eq, %arg2, %c0_i32_29 : i32
    %52 = arith.extui %51 : i1 to i32
    %c0_i32_30 = arith.constant 0 : i32
    %53 = arith.cmpi ne, %52, %c0_i32_30 : i32
    scf.if %53 {
      %c0_31 = arith.constant 0 : index
      %c0_32 = arith.constant 0 : index
      %54 = vector.load %arg10[%c0_31, %c0_32] : memref<32x8xf32, #tpu.memory_space<vmem>>, vector<32x8xf32>
      %c0_33 = arith.constant 0 : index
      %c0_34 = arith.constant 0 : index
      %55 = vector.load %arg9[%c0_33, %c0_34] : memref<32x1xf32, #tpu.memory_space<vmem>>, vector<32x1xf32>
      %56 = tpu.reciprocal %55 {approx = true} : vector<32x1xf32> -> vector<32x1xf32>
      %57 = vector.broadcast %56 : vector<32x1xf32> to vector<32x8xf32>
      %58 = arith.mulf %54, %57 : vector<32x8xf32>
      %c0_35 = arith.constant 0 : index
      %c0_36 = arith.constant 0 : index
      %c0_37 = arith.constant 0 : index
      %59 = vector.load %arg7[%c0_35, %c0_36, %c0_37] : memref<1x32x8xf32, #tpu.memory_space<vmem>>, vector<1x32x8xf32>
      %60 = vector.shape_cast %59 : vector<1x32x8xf32> to vector<32x8xf32>
      %61 = vector.shape_cast %58 : vector<32x8xf32> to vector<1x32x8xf32>
      tpu.vector_store %arg7[%c0_35, %c0_36, %c0_37], %61 {strides = array<i32>} : memref<1x32x8xf32, #tpu.memory_space<vmem>>, vector<1x32x8xf32>,
    } else {
    }
    return
  }
  func.func @transform_0(%arg0: i32, %arg1: i32, %arg2: i32) -> (i32, i32, i32) {
    %c0_i32 = arith.constant 0 : i32
    %c0_i32_0 = arith.constant 0 : i32
    return %arg0, %arg1, %c0_i32 : i32, i32, i32
  }
  func.func @transform_1(%arg0: i32, %arg1: i32, %arg2: i32) -> (i32, i32, i32) {
    %c0_i32 = arith.constant 0 : i32
    %c0_i32_0 = arith.constant 0 : i32
    return %arg0, %arg2, %c0_i32 : i32, i32, i32
  }
  func.func @transform_2(%arg0: i32, %arg1: i32, %arg2: i32) -> (i32, i32, i32) {
    %c0_i32 = arith.constant 0 : i32
    %c0_i32_0 = arith.constant 0 : i32
    return %arg0, %arg2, %c0_i32 : i32, i32, i32
  }
  func.func @transform_3(%arg0: i32, %arg1: i32, %arg2: i32) -> (i32, i32) {
    %c0_i32 = arith.constant 0 : i32
    return %arg1, %arg2 : i32, i32
  }
  func.func @transform_4(%arg0: i32, %arg1: i32, %arg2: i32) -> (i32, i32, i32) {
    %c0_i32 = arith.constant 0 : i32
    %c0_i32_0 = arith.constant 0 : i32
    return %arg0, %arg1, %c0_i32 : i32, i32, i32
  }
}

module attributes {stable_mosaic.version = 11 : i64} {
  func.func @_matmul_bias_kernel(%arg0: i32, %arg1: i32, %arg2: i32, %arg3: memref<32x32xf32, #tpu.memory_space<vmem>>, %arg4: memref<32x96xf32, #tpu.memory_space<vmem>>, %arg5: memref<1x96xf32, #tpu.memory_space<vmem>>, %arg6: memref<32x96xf32, #tpu.memory_space<vmem>>, %arg7: memref<32x96xf32, #tpu.memory_space<vmem>>) attributes {dimension_semantics = [#tpu.dimension_semantics<parallel>, #tpu.dimension_semantics<parallel>, #tpu.dimension_semantics<arbitrary>], iteration_bounds = array<i64: 2, 1, 1>, scalar_prefetch = 0 : i64, scratch_operands = 1 : i64, tpu.core_type = #tpu.core_type<tc>, window_params = [{transform_indices = @transform_0, window_bounds = array<i64: 32, 32>}, {transform_indices = @transform_1, window_bounds = array<i64: 32, 96>}, {transform_indices = @transform_2, window_bounds = array<i64: 1, 96>}, {transform_indices = @transform_3, window_bounds = array<i64: 32, 96>}]} {
    %c0_i32 = arith.constant 0 : i32
    %0 = arith.cmpi eq, %arg2, %c0_i32 : i32
    %1 = arith.extui %0 : i1 to i32
    %c0_i32_0 = arith.constant 0 : i32
    %2 = arith.cmpi ne, %1, %c0_i32_0 : i32
    scf.if %2 {
      %cst_10 = arith.constant 0.000000e+00 : f32
      %14 = vector.broadcast %cst_10 : f32 to vector<32x96xf32>
      %c0_11 = arith.constant 0 : index
      %c0_12 = arith.constant 0 : index
      %15 = vector.load %arg7[%c0_11, %c0_12] : memref<32x96xf32, #tpu.memory_space<vmem>>, vector<32x96xf32>
      tpu.vector_store %arg7[%c0_11, %c0_12], %14 {strides = array<i32>} : memref<32x96xf32, #tpu.memory_space<vmem>>, vector<32x96xf32>,
    } else {
    }
    %c0 = arith.constant 0 : index
    %c0_1 = arith.constant 0 : index
    %3 = vector.load %arg7[%c0, %c0_1] : memref<32x96xf32, #tpu.memory_space<vmem>>, vector<32x96xf32>
    %c0_2 = arith.constant 0 : index
    %c0_3 = arith.constant 0 : index
    %4 = vector.load %arg3[%c0_2, %c0_3] : memref<32x32xf32, #tpu.memory_space<vmem>>, vector<32x32xf32>
    %5 = arith.truncf %4 : vector<32x32xf32> to vector<32x32xbf16>
    %c0_4 = arith.constant 0 : index
    %c0_5 = arith.constant 0 : index
    %6 = vector.load %arg4[%c0_4, %c0_5] : memref<32x96xf32, #tpu.memory_space<vmem>>, vector<32x96xf32>
    %7 = arith.truncf %6 : vector<32x96xf32> to vector<32x96xbf16>
    %cst = arith.constant dense<0.000000e+00> : vector<32x96xf32>
    %8 = tpu.matmul %5, %7, %cst {dimension_numbers = #tpu.dot_dimension_numbers<[1], [0], [0], [1], [0, 0, 1, 1], [], []>} : vector<32x32xbf16>, vector<32x96xbf16>, vector<32x96xf32> -> vector<32x96xf32>
    %9 = arith.addf %3, %8 : vector<32x96xf32>
    %c0_6 = arith.constant 0 : index
    %c0_7 = arith.constant 0 : index
    %10 = vector.load %arg7[%c0_6, %c0_7] : memref<32x96xf32, #tpu.memory_space<vmem>>, vector<32x96xf32>
    tpu.vector_store %arg7[%c0_6, %c0_7], %9 {strides = array<i32>} : memref<32x96xf32, #tpu.memory_space<vmem>>, vector<32x96xf32>,
    %c0_i32_8 = arith.constant 0 : i32
    %11 = arith.cmpi eq, %arg2, %c0_i32_8 : i32
    %12 = arith.extui %11 : i1 to i32
    %c0_i32_9 = arith.constant 0 : i32
    %13 = arith.cmpi ne, %12, %c0_i32_9 : i32
    scf.if %13 {
      %c0_10 = arith.constant 0 : index
      %c0_11 = arith.constant 0 : index
      %14 = vector.load %arg7[%c0_10, %c0_11] : memref<32x96xf32, #tpu.memory_space<vmem>>, vector<32x96xf32>
      %c0_12 = arith.constant 0 : index
      %c0_13 = arith.constant 0 : index
      %15 = vector.load %arg5[%c0_12, %c0_13] : memref<1x96xf32, #tpu.memory_space<vmem>>, vector<1x96xf32>
      %16 = vector.broadcast %15 : vector<1x96xf32> to vector<32x96xf32>
      %17 = arith.addf %14, %16 : vector<32x96xf32>
      %c0_14 = arith.constant 0 : index
      %c0_15 = arith.constant 0 : index
      %18 = vector.load %arg6[%c0_14, %c0_15] : memref<32x96xf32, #tpu.memory_space<vmem>>, vector<32x96xf32>
      tpu.vector_store %arg6[%c0_14, %c0_15], %17 {strides = array<i32>} : memref<32x96xf32, #tpu.memory_space<vmem>>, vector<32x96xf32>,
    } else {
    }
    return
  }
  func.func @transform_0(%arg0: i32, %arg1: i32, %arg2: i32) -> (i32, i32) {
    %c0_i32 = arith.constant 0 : i32
    return %arg0, %arg2 : i32, i32
  }
  func.func @transform_1(%arg0: i32, %arg1: i32, %arg2: i32) -> (i32, i32) {
    %c0_i32 = arith.constant 0 : i32
    return %arg2, %arg1 : i32, i32
  }
  func.func @transform_2(%arg0: i32, %arg1: i32, %arg2: i32) -> (i32, i32) {
    %c0_i32 = arith.constant 0 : i32
    %c0_i32_0 = arith.constant 0 : i32
    return %c0_i32, %arg1 : i32, i32
  }
  func.func @transform_3(%arg0: i32, %arg1: i32, %arg2: i32) -> (i32, i32) {
    %c0_i32 = arith.constant 0 : i32
    return %arg0, %arg1 : i32, i32
  }
}

module attributes {stable_mosaic.version = 11 : i64} {
  func.func @_attn_out_kernel(%arg0: i32, %arg1: memref<32x32xf32, #tpu.memory_space<vmem>>, %arg2: memref<32x32xf32, #tpu.memory_space<vmem>>, %arg3: memref<32x32xf32, #tpu.memory_space<vmem>>, %arg4: memref<1x32xf32, #tpu.memory_space<vmem>>, %arg5: memref<1x32xf32, #tpu.memory_space<vmem>>, %arg6: memref<1x32xf32, #tpu.memory_space<vmem>>, %arg7: memref<32x32xf32, #tpu.memory_space<vmem>>) attributes {dimension_semantics = [#tpu.dimension_semantics<parallel>], iteration_bounds = array<i64: 2>, scalar_prefetch = 0 : i64, scratch_operands = 0 : i64, tpu.core_type = #tpu.core_type<tc>, window_params = [{transform_indices = @transform_0, window_bounds = array<i64: 32, 32>}, {transform_indices = @transform_1, window_bounds = array<i64: 32, 32>}, {pipeline_mode = #tpu.pipeline_mode<synchronous>, transform_indices = @transform_2, window_bounds = array<i64: 32, 32>}, {pipeline_mode = #tpu.pipeline_mode<synchronous>, transform_indices = @transform_3, window_bounds = array<i64: 1, 32>}, {pipeline_mode = #tpu.pipeline_mode<synchronous>, transform_indices = @transform_4, window_bounds = array<i64: 1, 32>}, {pipeline_mode = #tpu.pipeline_mode<synchronous>, transform_indices = @transform_5, window_bounds = array<i64: 1, 32>}, {transform_indices = @transform_6, window_bounds = array<i64: 32, 32>}]} {
    %c0 = arith.constant 0 : index
    %c0_0 = arith.constant 0 : index
    %0 = vector.load %arg1[%c0, %c0_0] : memref<32x32xf32, #tpu.memory_space<vmem>>, vector<32x32xf32>
    %1 = arith.negf %0 : vector<32x32xf32>
    %2 = math.exp %1 : vector<32x32xf32>
    %cst = arith.constant 1.000000e+00 : f32
    %3 = vector.broadcast %cst : f32 to vector<32x32xf32>
    %4 = arith.addf %3, %2 : vector<32x32xf32>
    %5 = arith.divf %3, %4 : vector<32x32xf32>
    %6 = arith.mulf %0, %5 : vector<32x32xf32>
    %7 = arith.truncf %6 : vector<32x32xf32> to vector<32x32xbf16>
    %c0_1 = arith.constant 0 : index
    %c0_2 = arith.constant 0 : index
    %8 = vector.load %arg3[%c0_1, %c0_2] : memref<32x32xf32, #tpu.memory_space<vmem>>, vector<32x32xf32>
    %9 = arith.truncf %8 : vector<32x32xf32> to vector<32x32xbf16>
    %cst_3 = arith.constant dense<0.000000e+00> : vector<32x32xf32>
    %10 = tpu.matmul %7, %9, %cst_3 {dimension_numbers = #tpu.dot_dimension_numbers<[1], [0], [0], [1], [0, 0, 1, 1], [], []>} : vector<32x32xbf16>, vector<32x32xbf16>, vector<32x32xf32> -> vector<32x32xf32>
    %c0_4 = arith.constant 0 : index
    %c0_5 = arith.constant 0 : index
    %11 = vector.load %arg4[%c0_4, %c0_5] : memref<1x32xf32, #tpu.memory_space<vmem>>, vector<1x32xf32>
    %12 = vector.broadcast %11 : vector<1x32xf32> to vector<32x32xf32>
    %13 = arith.addf %10, %12 : vector<32x32xf32>
    %c0_6 = arith.constant 0 : index
    %c0_7 = arith.constant 0 : index
    %14 = vector.load %arg2[%c0_6, %c0_7] : memref<32x32xf32, #tpu.memory_space<vmem>>, vector<32x32xf32>
    %15 = arith.addf %13, %14 : vector<32x32xf32>
    %cst_8 = arith.constant dense<0.000000e+00> : vector<32xf32>
    %16 = vector.multi_reduction <add>, %15, %cst_8 [1] : vector<32x32xf32> to vector<32xf32>
    %17 = vector.shape_cast %16 : vector<32xf32> to vector<32x1xf32>
    %cst_9 = arith.constant 3.200000e+01 : f32
    %18 = vector.broadcast %cst_9 : f32 to vector<32x1xf32>
    %19 = arith.divf %17, %18 : vector<32x1xf32>
    %20 = vector.broadcast %19 : vector<32x1xf32> to vector<32x32xf32>
    %21 = arith.subf %15, %20 : vector<32x32xf32>
    %22 = arith.mulf %21, %21 : vector<32x32xf32>
    %cst_10 = arith.constant dense<0.000000e+00> : vector<32xf32>
    %23 = vector.multi_reduction <add>, %22, %cst_10 [1] : vector<32x32xf32> to vector<32xf32>
    %24 = vector.shape_cast %23 : vector<32xf32> to vector<32x1xf32>
    %cst_11 = arith.constant 3.200000e+01 : f32
    %25 = vector.broadcast %cst_11 : f32 to vector<32x1xf32>
    %26 = arith.divf %24, %25 : vector<32x1xf32>
    %27 = vector.broadcast %19 : vector<32x1xf32> to vector<32x32xf32>
    %28 = arith.subf %15, %27 : vector<32x32xf32>
    %cst_12 = arith.constant 9.99999974E-6 : f32
    %29 = vector.broadcast %cst_12 : f32 to vector<32x1xf32>
    %30 = arith.addf %26, %29 : vector<32x1xf32>
    %31 = math.rsqrt %30 : vector<32x1xf32>
    %32 = vector.broadcast %31 : vector<32x1xf32> to vector<32x32xf32>
    %33 = arith.mulf %28, %32 : vector<32x32xf32>
    %c0_13 = arith.constant 0 : index
    %c0_14 = arith.constant 0 : index
    %34 = vector.load %arg5[%c0_13, %c0_14] : memref<1x32xf32, #tpu.memory_space<vmem>>, vector<1x32xf32>
    %35 = vector.broadcast %34 : vector<1x32xf32> to vector<32x32xf32>
    %36 = arith.mulf %33, %35 : vector<32x32xf32>
    %c0_15 = arith.constant 0 : index
    %c0_16 = arith.constant 0 : index
    %37 = vector.load %arg6[%c0_15, %c0_16] : memref<1x32xf32, #tpu.memory_space<vmem>>, vector<1x32xf32>
    %38 = vector.broadcast %37 : vector<1x32xf32> to vector<32x32xf32>
    %39 = arith.addf %36, %38 : vector<32x32xf32>
    %c0_17 = arith.constant 0 : index
    %c0_18 = arith.constant 0 : index
    %40 = vector.load %arg7[%c0_17, %c0_18] : memref<32x32xf32, #tpu.memory_space<vmem>>, vector<32x32xf32>
    tpu.vector_store %arg7[%c0_17, %c0_18], %39 {strides = array<i32>} : memref<32x32xf32, #tpu.memory_space<vmem>>, vector<32x32xf32>,
    return
  }
  func.func @transform_0(%arg0: i32) -> (i32, i32) {
    %c0_i32 = arith.constant 0 : i32
    %c0_i32_0 = arith.constant 0 : i32
    return %arg0, %c0_i32 : i32, i32
  }
  func.func @transform_1(%arg0: i32) -> (i32, i32) {
    %c0_i32 = arith.constant 0 : i32
    %c0_i32_0 = arith.constant 0 : i32
    return %arg0, %c0_i32 : i32, i32
  }
  func.func @transform_2(%arg0: i32) -> (i32, i32) {
    %c0_i32 = arith.constant 0 : i32
    %c0_i32_0 = arith.constant 0 : i32
    %c0_i32_1 = arith.constant 0 : i32
    return %c0_i32, %c0_i32_0 : i32, i32
  }
  func.func @transform_3(%arg0: i32) -> (i32, i32) {
    %c0_i32 = arith.constant 0 : i32
    %c0_i32_0 = arith.constant 0 : i32
    %c0_i32_1 = arith.constant 0 : i32
    return %c0_i32, %c0_i32_0 : i32, i32
  }
  func.func @transform_4(%arg0: i32) -> (i32, i32) {
    %c0_i32 = arith.constant 0 : i32
    %c0_i32_0 = arith.constant 0 : i32
    %c0_i32_1 = arith.constant 0 : i32
    return %c0_i32, %c0_i32_0 : i32, i32
  }
  func.func @transform_5(%arg0: i32) -> (i32, i32) {
    %c0_i32 = arith.constant 0 : i32
    %c0_i32_0 = arith.constant 0 : i32
    %c0_i32_1 = arith.constant 0 : i32
    return %c0_i32, %c0_i32_0 : i32, i32
  }
  func.func @transform_6(%arg0: i32) -> (i32, i32) {
    %c0_i32 = arith.constant 0 : i32
    %c0_i32_0 = arith.constant 0 : i32
    return %arg0, %c0_i32 : i32, i32
  }
}

module attributes {stable_mosaic.version = 11 : i64} {
  func.func @_ffn_kernel(%arg0: i32, %arg1: memref<32x32xf32, #tpu.memory_space<vmem>>, %arg2: memref<32x128xf32, #tpu.memory_space<vmem>>, %arg3: memref<1x128xf32, #tpu.memory_space<vmem>>, %arg4: memref<128x32xf32, #tpu.memory_space<vmem>>, %arg5: memref<1x32xf32, #tpu.memory_space<vmem>>, %arg6: memref<1x32xf32, #tpu.memory_space<vmem>>, %arg7: memref<1x32xf32, #tpu.memory_space<vmem>>, %arg8: memref<32x32xf32, #tpu.memory_space<vmem>>) attributes {dimension_semantics = [#tpu.dimension_semantics<parallel>], iteration_bounds = array<i64: 2>, scalar_prefetch = 0 : i64, scratch_operands = 0 : i64, tpu.core_type = #tpu.core_type<tc>, window_params = [{transform_indices = @transform_0, window_bounds = array<i64: 32, 32>}, {pipeline_mode = #tpu.pipeline_mode<synchronous>, transform_indices = @transform_1, window_bounds = array<i64: 32, 128>}, {pipeline_mode = #tpu.pipeline_mode<synchronous>, transform_indices = @transform_2, window_bounds = array<i64: 1, 128>}, {pipeline_mode = #tpu.pipeline_mode<synchronous>, transform_indices = @transform_3, window_bounds = array<i64: 128, 32>}, {pipeline_mode = #tpu.pipeline_mode<synchronous>, transform_indices = @transform_4, window_bounds = array<i64: 1, 32>}, {pipeline_mode = #tpu.pipeline_mode<synchronous>, transform_indices = @transform_5, window_bounds = array<i64: 1, 32>}, {pipeline_mode = #tpu.pipeline_mode<synchronous>, transform_indices = @transform_6, window_bounds = array<i64: 1, 32>}, {transform_indices = @transform_7, window_bounds = array<i64: 32, 32>}]} {
    %c0 = arith.constant 0 : index
    %c0_0 = arith.constant 0 : index
    %0 = vector.load %arg1[%c0, %c0_0] : memref<32x32xf32, #tpu.memory_space<vmem>>, vector<32x32xf32>
    %1 = arith.truncf %0 : vector<32x32xf32> to vector<32x32xbf16>
    %c0_1 = arith.constant 0 : index
    %c0_2 = arith.constant 0 : index
    %2 = vector.load %arg2[%c0_1, %c0_2] : memref<32x128xf32, #tpu.memory_space<vmem>>, vector<32x128xf32>
    %3 = arith.truncf %2 : vector<32x128xf32> to vector<32x128xbf16>
    %cst = arith.constant dense<0.000000e+00> : vector<32x128xf32>
    %4 = tpu.matmul %1, %3, %cst {dimension_numbers = #tpu.dot_dimension_numbers<[1], [0], [0], [1], [0, 0, 1, 1], [], []>} : vector<32x32xbf16>, vector<32x128xbf16>, vector<32x128xf32> -> vector<32x128xf32>
    %c0_3 = arith.constant 0 : index
    %c0_4 = arith.constant 0 : index
    %5 = vector.load %arg3[%c0_3, %c0_4] : memref<1x128xf32, #tpu.memory_space<vmem>>, vector<1x128xf32>
    %6 = vector.broadcast %5 : vector<1x128xf32> to vector<32x128xf32>
    %7 = arith.addf %4, %6 : vector<32x128xf32>
    %8 = arith.negf %7 : vector<32x128xf32>
    %9 = math.exp %8 : vector<32x128xf32>
    %cst_5 = arith.constant 1.000000e+00 : f32
    %10 = vector.broadcast %cst_5 : f32 to vector<32x128xf32>
    %11 = arith.addf %10, %9 : vector<32x128xf32>
    %12 = arith.divf %10, %11 : vector<32x128xf32>
    %13 = arith.mulf %7, %12 : vector<32x128xf32>
    %14 = arith.truncf %13 : vector<32x128xf32> to vector<32x128xbf16>
    %c0_6 = arith.constant 0 : index
    %c0_7 = arith.constant 0 : index
    %15 = vector.load %arg4[%c0_6, %c0_7] : memref<128x32xf32, #tpu.memory_space<vmem>>, vector<128x32xf32>
    %16 = arith.truncf %15 : vector<128x32xf32> to vector<128x32xbf16>
    %cst_8 = arith.constant dense<0.000000e+00> : vector<32x32xf32>
    %17 = tpu.matmul %14, %16, %cst_8 {dimension_numbers = #tpu.dot_dimension_numbers<[1], [0], [0], [1], [0, 0, 1, 1], [], []>} : vector<32x128xbf16>, vector<128x32xbf16>, vector<32x32xf32> -> vector<32x32xf32>
    %c0_9 = arith.constant 0 : index
    %c0_10 = arith.constant 0 : index
    %18 = vector.load %arg5[%c0_9, %c0_10] : memref<1x32xf32, #tpu.memory_space<vmem>>, vector<1x32xf32>
    %19 = vector.broadcast %18 : vector<1x32xf32> to vector<32x32xf32>
    %20 = arith.addf %17, %19 : vector<32x32xf32>
    %21 = arith.addf %20, %0 : vector<32x32xf32>
    %cst_11 = arith.constant dense<0.000000e+00> : vector<32xf32>
    %22 = vector.multi_reduction <add>, %21, %cst_11 [1] : vector<32x32xf32> to vector<32xf32>
    %23 = vector.shape_cast %22 : vector<32xf32> to vector<32x1xf32>
    %cst_12 = arith.constant 3.200000e+01 : f32
    %24 = vector.broadcast %cst_12 : f32 to vector<32x1xf32>
    %25 = arith.divf %23, %24 : vector<32x1xf32>
    %26 = vector.broadcast %25 : vector<32x1xf32> to vector<32x32xf32>
    %27 = arith.subf %21, %26 : vector<32x32xf32>
    %28 = arith.mulf %27, %27 : vector<32x32xf32>
    %cst_13 = arith.constant dense<0.000000e+00> : vector<32xf32>
    %29 = vector.multi_reduction <add>, %28, %cst_13 [1] : vector<32x32xf32> to vector<32xf32>
    %30 = vector.shape_cast %29 : vector<32xf32> to vector<32x1xf32>
    %cst_14 = arith.constant 3.200000e+01 : f32
    %31 = vector.broadcast %cst_14 : f32 to vector<32x1xf32>
    %32 = arith.divf %30, %31 : vector<32x1xf32>
    %33 = vector.broadcast %25 : vector<32x1xf32> to vector<32x32xf32>
    %34 = arith.subf %21, %33 : vector<32x32xf32>
    %cst_15 = arith.constant 9.99999974E-6 : f32
    %35 = vector.broadcast %cst_15 : f32 to vector<32x1xf32>
    %36 = arith.addf %32, %35 : vector<32x1xf32>
    %37 = math.rsqrt %36 : vector<32x1xf32>
    %38 = vector.broadcast %37 : vector<32x1xf32> to vector<32x32xf32>
    %39 = arith.mulf %34, %38 : vector<32x32xf32>
    %c0_16 = arith.constant 0 : index
    %c0_17 = arith.constant 0 : index
    %40 = vector.load %arg6[%c0_16, %c0_17] : memref<1x32xf32, #tpu.memory_space<vmem>>, vector<1x32xf32>
    %41 = vector.broadcast %40 : vector<1x32xf32> to vector<32x32xf32>
    %42 = arith.mulf %39, %41 : vector<32x32xf32>
    %c0_18 = arith.constant 0 : index
    %c0_19 = arith.constant 0 : index
    %43 = vector.load %arg7[%c0_18, %c0_19] : memref<1x32xf32, #tpu.memory_space<vmem>>, vector<1x32xf32>
    %44 = vector.broadcast %43 : vector<1x32xf32> to vector<32x32xf32>
    %45 = arith.addf %42, %44 : vector<32x32xf32>
    %c0_20 = arith.constant 0 : index
    %c0_21 = arith.constant 0 : index
    %46 = vector.load %arg8[%c0_20, %c0_21] : memref<32x32xf32, #tpu.memory_space<vmem>>, vector<32x32xf32>
    tpu.vector_store %arg8[%c0_20, %c0_21], %45 {strides = array<i32>} : memref<32x32xf32, #tpu.memory_space<vmem>>, vector<32x32xf32>,
    return
  }
  func.func @transform_0(%arg0: i32) -> (i32, i32) {
    %c0_i32 = arith.constant 0 : i32
    %c0_i32_0 = arith.constant 0 : i32
    return %arg0, %c0_i32 : i32, i32
  }
  func.func @transform_1(%arg0: i32) -> (i32, i32) {
    %c0_i32 = arith.constant 0 : i32
    %c0_i32_0 = arith.constant 0 : i32
    %c0_i32_1 = arith.constant 0 : i32
    return %c0_i32, %c0_i32_0 : i32, i32
  }
  func.func @transform_2(%arg0: i32) -> (i32, i32) {
    %c0_i32 = arith.constant 0 : i32
    %c0_i32_0 = arith.constant 0 : i32
    %c0_i32_1 = arith.constant 0 : i32
    return %c0_i32, %c0_i32_0 : i32, i32
  }
  func.func @transform_3(%arg0: i32) -> (i32, i32) {
    %c0_i32 = arith.constant 0 : i32
    %c0_i32_0 = arith.constant 0 : i32
    %c0_i32_1 = arith.constant 0 : i32
    return %c0_i32, %c0_i32_0 : i32, i32
  }
  func.func @transform_4(%arg0: i32) -> (i32, i32) {
    %c0_i32 = arith.constant 0 : i32
    %c0_i32_0 = arith.constant 0 : i32
    %c0_i32_1 = arith.constant 0 : i32
    return %c0_i32, %c0_i32_0 : i32, i32
  }
  func.func @transform_5(%arg0: i32) -> (i32, i32) {
    %c0_i32 = arith.constant 0 : i32
    %c0_i32_0 = arith.constant 0 : i32
    %c0_i32_1 = arith.constant 0 : i32
    return %c0_i32, %c0_i32_0 : i32, i32
  }
  func.func @transform_6(%arg0: i32) -> (i32, i32) {
    %c0_i32 = arith.constant 0 : i32
    %c0_i32_0 = arith.constant 0 : i32
    %c0_i32_1 = arith.constant 0 : i32
    return %c0_i32, %c0_i32_0 : i32, i32
  }
  func.func @transform_7(%arg0: i32) -> (i32, i32) {
    %c0_i32 = arith.constant 0 : i32
    %c0_i32_0 = arith.constant 0 : i32
    return %arg0, %c0_i32 : i32, i32
  }
}

module attributes {stable_mosaic.version = 11 : i64} {
  func.func @_ffn_kernel(%arg0: i32, %arg1: memref<32x32xf32, #tpu.memory_space<vmem>>, %arg2: memref<32x128xf32, #tpu.memory_space<vmem>>, %arg3: memref<1x128xf32, #tpu.memory_space<vmem>>, %arg4: memref<128x32xf32, #tpu.memory_space<vmem>>, %arg5: memref<1x32xf32, #tpu.memory_space<vmem>>, %arg6: memref<1x32xf32, #tpu.memory_space<vmem>>, %arg7: memref<1x32xf32, #tpu.memory_space<vmem>>, %arg8: memref<32x32xf32, #tpu.memory_space<vmem>>) attributes {dimension_semantics = [#tpu.dimension_semantics<parallel>], iteration_bounds = array<i64: 2>, scalar_prefetch = 0 : i64, scratch_operands = 0 : i64, tpu.core_type = #tpu.core_type<tc>, window_params = [{transform_indices = @transform_0, window_bounds = array<i64: 32, 32>}, {pipeline_mode = #tpu.pipeline_mode<synchronous>, transform_indices = @transform_1, window_bounds = array<i64: 32, 128>}, {pipeline_mode = #tpu.pipeline_mode<synchronous>, transform_indices = @transform_2, window_bounds = array<i64: 1, 128>}, {pipeline_mode = #tpu.pipeline_mode<synchronous>, transform_indices = @transform_3, window_bounds = array<i64: 128, 32>}, {pipeline_mode = #tpu.pipeline_mode<synchronous>, transform_indices = @transform_4, window_bounds = array<i64: 1, 32>}, {pipeline_mode = #tpu.pipeline_mode<synchronous>, transform_indices = @transform_5, window_bounds = array<i64: 1, 32>}, {pipeline_mode = #tpu.pipeline_mode<synchronous>, transform_indices = @transform_6, window_bounds = array<i64: 1, 32>}, {transform_indices = @transform_7, window_bounds = array<i64: 32, 32>}]} {
    %c0 = arith.constant 0 : index
    %c0_0 = arith.constant 0 : index
    %0 = vector.load %arg1[%c0, %c0_0] : memref<32x32xf32, #tpu.memory_space<vmem>>, vector<32x32xf32>
    %1 = arith.truncf %0 : vector<32x32xf32> to vector<32x32xbf16>
    %c0_1 = arith.constant 0 : index
    %c0_2 = arith.constant 0 : index
    %2 = vector.load %arg2[%c0_1, %c0_2] : memref<32x128xf32, #tpu.memory_space<vmem>>, vector<32x128xf32>
    %3 = arith.truncf %2 : vector<32x128xf32> to vector<32x128xbf16>
    %cst = arith.constant dense<0.000000e+00> : vector<32x128xf32>
    %4 = tpu.matmul %1, %3, %cst {dimension_numbers = #tpu.dot_dimension_numbers<[1], [0], [0], [1], [0, 0, 1, 1], [], []>} : vector<32x32xbf16>, vector<32x128xbf16>, vector<32x128xf32> -> vector<32x128xf32>
    %c0_3 = arith.constant 0 : index
    %c0_4 = arith.constant 0 : index
    %5 = vector.load %arg3[%c0_3, %c0_4] : memref<1x128xf32, #tpu.memory_space<vmem>>, vector<1x128xf32>
    %6 = vector.broadcast %5 : vector<1x128xf32> to vector<32x128xf32>
    %7 = arith.addf %4, %6 : vector<32x128xf32>
    %8 = arith.negf %7 : vector<32x128xf32>
    %9 = math.exp %8 : vector<32x128xf32>
    %cst_5 = arith.constant 1.000000e+00 : f32
    %10 = vector.broadcast %cst_5 : f32 to vector<32x128xf32>
    %11 = arith.addf %10, %9 : vector<32x128xf32>
    %12 = arith.divf %10, %11 : vector<32x128xf32>
    %13 = arith.mulf %7, %12 : vector<32x128xf32>
    %14 = arith.truncf %13 : vector<32x128xf32> to vector<32x128xbf16>
    %c0_6 = arith.constant 0 : index
    %c0_7 = arith.constant 0 : index
    %15 = vector.load %arg4[%c0_6, %c0_7] : memref<128x32xf32, #tpu.memory_space<vmem>>, vector<128x32xf32>
    %16 = arith.truncf %15 : vector<128x32xf32> to vector<128x32xbf16>
    %cst_8 = arith.constant dense<0.000000e+00> : vector<32x32xf32>
    %17 = tpu.matmul %14, %16, %cst_8 {dimension_numbers = #tpu.dot_dimension_numbers<[1], [0], [0], [1], [0, 0, 1, 1], [], []>} : vector<32x128xbf16>, vector<128x32xbf16>, vector<32x32xf32> -> vector<32x32xf32>
    %c0_9 = arith.constant 0 : index
    %c0_10 = arith.constant 0 : index
    %18 = vector.load %arg5[%c0_9, %c0_10] : memref<1x32xf32, #tpu.memory_space<vmem>>, vector<1x32xf32>
    %19 = vector.broadcast %18 : vector<1x32xf32> to vector<32x32xf32>
    %20 = arith.addf %17, %19 : vector<32x32xf32>
    %21 = arith.addf %20, %0 : vector<32x32xf32>
    %cst_11 = arith.constant dense<0.000000e+00> : vector<32xf32>
    %22 = vector.multi_reduction <add>, %21, %cst_11 [1] : vector<32x32xf32> to vector<32xf32>
    %23 = vector.shape_cast %22 : vector<32xf32> to vector<32x1xf32>
    %cst_12 = arith.constant 3.200000e+01 : f32
    %24 = vector.broadcast %cst_12 : f32 to vector<32x1xf32>
    %25 = arith.divf %23, %24 : vector<32x1xf32>
    %26 = vector.broadcast %25 : vector<32x1xf32> to vector<32x32xf32>
    %27 = arith.subf %21, %26 : vector<32x32xf32>
    %28 = arith.mulf %27, %27 : vector<32x32xf32>
    %cst_13 = arith.constant dense<0.000000e+00> : vector<32xf32>
    %29 = vector.multi_reduction <add>, %28, %cst_13 [1] : vector<32x32xf32> to vector<32xf32>
    %30 = vector.shape_cast %29 : vector<32xf32> to vector<32x1xf32>
    %cst_14 = arith.constant 3.200000e+01 : f32
    %31 = vector.broadcast %cst_14 : f32 to vector<32x1xf32>
    %32 = arith.divf %30, %31 : vector<32x1xf32>
    %33 = vector.broadcast %25 : vector<32x1xf32> to vector<32x32xf32>
    %34 = arith.subf %21, %33 : vector<32x32xf32>
    %cst_15 = arith.constant 9.99999974E-6 : f32
    %35 = vector.broadcast %cst_15 : f32 to vector<32x1xf32>
    %36 = arith.addf %32, %35 : vector<32x1xf32>
    %37 = math.rsqrt %36 : vector<32x1xf32>
    %38 = vector.broadcast %37 : vector<32x1xf32> to vector<32x32xf32>
    %39 = arith.mulf %34, %38 : vector<32x32xf32>
    %c0_16 = arith.constant 0 : index
    %c0_17 = arith.constant 0 : index
    %40 = vector.load %arg6[%c0_16, %c0_17] : memref<1x32xf32, #tpu.memory_space<vmem>>, vector<1x32xf32>
    %41 = vector.broadcast %40 : vector<1x32xf32> to vector<32x32xf32>
    %42 = arith.mulf %39, %41 : vector<32x32xf32>
    %c0_18 = arith.constant 0 : index
    %c0_19 = arith.constant 0 : index
    %43 = vector.load %arg7[%c0_18, %c0_19] : memref<1x32xf32, #tpu.memory_space<vmem>>, vector<1x32xf32>
    %44 = vector.broadcast %43 : vector<1x32xf32> to vector<32x32xf32>
    %45 = arith.addf %42, %44 : vector<32x32xf32>
    %c0_20 = arith.constant 0 : index
    %c0_21 = arith.constant 0 : index
    %46 = vector.load %arg8[%c0_20, %c0_21] : memref<32x32xf32, #tpu.memory_space<vmem>>, vector<32x32xf32>
    tpu.vector_store %arg8[%c0_20, %c0_21], %45 {strides = array<i32>} : memref<32x32xf32, #tpu.memory_space<vmem>>, vector<32x32xf32>,
    return
  }
  func.func @transform_0(%arg0: i32) -> (i32, i32) {
    %c0_i32 = arith.constant 0 : i32
    %c0_i32_0 = arith.constant 0 : i32
    return %arg0, %c0_i32 : i32, i32
  }
  func.func @transform_1(%arg0: i32) -> (i32, i32) {
    %c0_i32 = arith.constant 0 : i32
    %c0_i32_0 = arith.constant 0 : i32
    %c0_i32_1 = arith.constant 0 : i32
    return %c0_i32, %c0_i32_0 : i32, i32
  }
  func.func @transform_2(%arg0: i32) -> (i32, i32) {
    %c0_i32 = arith.constant 0 : i32
    %c0_i32_0 = arith.constant 0 : i32
    %c0_i32_1 = arith.constant 0 : i32
    return %c0_i32, %c0_i32_0 : i32, i32
  }
  func.func @transform_3(%arg0: i32) -> (i32, i32) {
    %c0_i32 = arith.constant 0 : i32
    %c0_i32_0 = arith.constant 0 : i32
    %c0_i32_1 = arith.constant 0 : i32
    return %c0_i32, %c0_i32_0 : i32, i32
  }
  func.func @transform_4(%arg0: i32) -> (i32, i32) {
    %c0_i32 = arith.constant 0 : i32
    %c0_i32_0 = arith.constant 0 : i32
    %c0_i32_1 = arith.constant 0 : i32
    return %c0_i32, %c0_i32_0 : i32, i32
  }
  func.func @transform_5(%arg0: i32) -> (i32, i32) {
    %c0_i32 = arith.constant 0 : i32
    %c0_i32_0 = arith.constant 0 : i32
    %c0_i32_1 = arith.constant 0 : i32
    return %c0_i32, %c0_i32_0 : i32, i32
  }
  func.func @transform_6(%arg0: i32) -> (i32, i32) {
    %c0_i32 = arith.constant 0 : i32
    %c0_i32_0 = arith.constant 0 : i32
    %c0_i32_1 = arith.constant 0 : i32
    return %c0_i32, %c0_i32_0 : i32, i32
  }
  func.func @transform_7(%arg0: i32) -> (i32, i32) {
    %c0_i32 = arith.constant 0 : i32
    %c0_i32_0 = arith.constant 0 : i32
    return %arg0, %c0_i32 : i32, i32
  }
}

</mosaic_0001>

<bundles_post_ra>
// kernel: _lambda_.8
= control target key start
LH: loop header
LB: loop body
LE: loop exit
PB: predicated region body
PF: predicated region fallthrough
CT: control target
= control target key end

     0   :  { %8 = vsyncpa [#allocation4], 0  ;;  %s819_s0 = inlined_call_operand.hbm [shape: f32[64,32], index: 0, kind: input, shape index: {}]   ;;  %s820_s1 = inlined_call_operand.vmem [shape: f32[32,96], index: 1, kind: input, shape index: {}]   ;;  %s821_s2 = inlined_call_operand.vmem [shape: f32[1,96], index: 2, kind: input, shape index: {}]   ;;  %s822_s3 = inlined_call_operand.vmem [shape: f32[64,96], index: 3, kind: output, shape index: {}]  }
   0x1   :  { %10 = vsyncpa [#allocation4 + $0x1], 0  ;;  %s697_s12 = smov 0   ;;  %s699_s13 = smov 0  }
   0x2   :  { %s701_s14 = smov 0   ;;  %s703_s15 = smov 0  }
   0x3   :  { %s705_s16 = smov 0   ;;  %s707_s17 = smov 0  }
   0x4 LB: > { %s504_s18 = sadd.s32 4294967295, %s671_s17   ;;  %s35_s19 = sadd.s32 1, %s667_s16  ;;  %s671_s17 = sphi %s707_s17, %s16_s17   ;;  %s667_s16 = sphi %s705_s16, %s830_s16   ;;  %s663_s15 = sphi %s703_s15, %s829_s15   ;;  %s659_s14 = sphi %s701_s14, %s828_s14   ;;  %s655_s13 = sphi %s699_s13, %s827_s13   ;;  %s651_s12 = sphi %s697_s12, %s826_s12  }
   0x5   : > { %p37_p0 = scmp.ge.s32.totalorder %s35_s19, 2  ;;  %s44_s20 = sadd.s32 1, %s659_s14 }
   0x6   : > { %p51_p1 = scmp.ne.s32.totalorder %s659_s14, %s655_s13  ;;  %p52_p2 = scmp.eq.s32.totalorder %s671_s17, 0 }
   0x7   : > { %s832_s19 = smov (%p37_p0, %s35_s19), 0  ;;  %p57_p4 = scmp.ne.s32.totalorder %s655_s13, %s651_s12 }
   0x8   : > { %p733_p3 = por %p52_p2, %p51_p1  ;;  %s39_s22 = ssub.s32 %s667_s16, %s832_s19 }
   0x9   : > { %p58_p5 = scmp.eq.s32.totalorder %s504_s18, 0  ;;  %p42_p6 = scmp.eq.s32.totalorder %s39_s22, 0 }
   0xa   : > { %p541_p8 = scmp.lt.s32.totalorder %s671_s17, 2  ;;  %s181_s25 = sand.u32 1, %s659_s14  }
   0xb   : > { %p740_p7 = por %p58_p5, %p57_p4  ;;  %s522_s26 = sshll.u32 %s667_s16, 9 }
   0xc   : > { %s746_s24 = scalar_select %p42_p6, %s659_s14, %s44_s20  }
   0xd   : > { %s510_s27 = sshll.u32 %s181_s25, 5  ;;  %s192_s30 = scalar_lea.hbm %s819_s0, %s522_s26 }
   0xe   : > { %s185_s4 = scalar_lea.vmem [#allocation3], %s510_s27  ;;  %p755_p9 = pnand %p541_p8, %p733_p3 }
   0xf   : > { %s193_s5 = sshll.u32 %s185_s4, 4  ;;  %s182_s7 = scalar_lea.sflag [#allocation4], %s181_s25  ;;  %s194_s5 = int_to_ptr.vmem [resolvable:$true] %s193_s5 }
  0x10   : > { %p595_p10 = pneg %p755_p9  ;;  %s606_s8 = scalar_lea.vmem %s194_s5, 512 }
  0x11   : > { %p607_p11 = scmp.ne.s32.totalorder %s194_s5, %s606_s8  ;;  %s673_s9 = smov [#allocation3]  }
  0x12   : > { %s611_s10 = sshll.u32 %s673_s9, 4  ;;  %s612_s10 = int_to_ptr.vmem [resolvable:$false] %s611_s10 }
  0x13   : > { %p609_p12 = pnand %p607_p11, %p595_p10  ;;  %s613_s11 = scalar_lea.vmem %s612_s10, 1024 }
  0x14   : > { %p614_p0 = scmp.lt.s32.totalorder %s194_s5, %s612_s10  ;;  %p615_p1 = scmp.lt.s32.totalorder %s613_s11, %s606_s8 }
  0x15   : > { %p610_p13 = pneg %p609_p12 }
  0x16   : > { %p616_p2 = por %p615_p1, %p614_p0 }
  0x18   : > { %p617_p3 = pnand %p616_p2, %p610_p13 }
  0x1a   : > { %620 = shalt.err (!%p617_p3)
}
  0x1b   : > { %s674_s12 = smov 128   ;;  %s675_s18 = smov 8  }
  0x1c   : > { %540 = dma.hbm_to_vmem [thread:$0]  (!%p755_p9), %s192_s30, 512, %s194_s5, %s182_s7, %s674_s12, %s674_s12, %s675_s18  }
  0x1d   : > { %p513_p4 = scmp.ge.s32.totalorder %s671_s17, 1  ;;  %p201_p5 = scmp.lt.s32.totalorder %s671_s17, 3 }
  0x1f   : > { %p202_p6 = pnand %p513_p4, %p201_p5 }
  0x20   : > { %s207_s20 = sand.u32 (!%p202_p6), 1, %s655_s13  }
  0x21   : > { %205 = sbr.rel (%p202_p6) target bundleno = 262 (0x106), region = 32  ;;  %s514_s21 = sshll.u32 (!%p202_p6), %s207_s20, 5 }
  0x22   : > { %s208_s22 = scalar_lea.sflag (!%p202_p6), [#allocation4], %s207_s20  ;;  %s211_s25 = scalar_lea.vmem (!%p202_p6), [#allocation3], %s514_s21 }
  0x26   : > { %646 = dma.done.wait (%p740_p7), %s208_s22, 512  }
  0x27   : > { %648 = vsyncadd (%p740_p7), %s208_s22, 4294966784  ;;  %vm275_vm0 = vcmask 785408   ;;  %v676_v0 = vmov 0.0   ;;  %v292_v1 = vld [vmem:[%s820_s1 + $0x10] sm:$0xff]  ;;  %v293_v2 = vld [vmem:[%s820_s1 + $0x18] sm:$0xff]  ;;  %vm296_vm1 = vcmask 261120  }
  0x28   : > { %278 = vst.msk [vmem:[#allocation2 + $0x10] sm:$0xff] %vm275_vm0, %v676_v0  ;;  %276 = vst.msk [vmem:[#allocation2] sm:$0xff] %vm275_vm0, %v676_v0  ;;  %v290_v3 = vld [vmem:[%s820_s1] sm:$0xff]  ;;  %v295_v4 = vpack.c.bf16 %v293_v2, %v292_v1  ;;  %v291_v5 = vld [vmem:[%s820_s1 + $0x8] sm:$0xff]  ;;  %s515_s6 = sshll.u32 %s663_s15, 2 }
  0x29   : > { %277 = vst.msk [vmem:[#allocation2 + $0x8] sm:$0xff] %vm275_vm0, %v676_v0  ;;  %279 = vst.msk [vmem:[#allocation2 + $0x18] sm:$0xff] %vm275_vm0, %v676_v0  ;;  %v284_v6 = vld [vmem:[%s211_s25] sm:$0xff]  ;;  %v285_v7 = vld [vmem:[%s211_s25 + $0x8] sm:$0xff]  ;;  %v294_v8 = vpack.c.bf16 %v291_v5, %v290_v3  ;;  %p262_p7 = scmp.lt.s32.totalorder %s515_s6, 7 }
  0x2a   : > { %v288_v9 = vpack.c.bf16 %v285_v7, %v284_v6  ;;  %527 = vmatprep.subr.bf16.mxu0 %v295_v4  ;;  %v286_v10 = vld [vmem:[%s211_s25 + $0x10] sm:$0xff]  ;;  %v287_v11 = vld [vmem:[%s211_s25 + $0x18] sm:$0xff]  ;;  %v519_v25 = vld [vmem:[%s821_s2] ss:$0 sm:$0xff] }
  0x2b   : > { %528 = vmatpush3.bf16.msra.mxu0 %v295_v4  ;;  %v289_v12 = vpack.c.bf16 %v287_v11, %v286_v10  ;;  %s834_s6 = smov (!%p262_p7, %s515_s6), 7 }
  0x2c   : > { %531 = vmatprep.mubr.msk.bf16.mxu0 %vm296_vm1, %v288_v9  ;;  %529 = vmatprep.subr.bf16.mxu0 %v294_v8  ;;  %s516_s15 = sshll.u32 %s834_s6, 3 }
  0x2d   : > { %s268_s11 = scalar_lea.vmem %s822_s3, %s516_s15 }
  0x2f   : > { %530 = vmatpush3.bf16.msra.mxu0 %v294_v8  ;;  %v282_v13 = vld [vmem:[#allocation2 + $0x10] sm:$0xff]  ;;  %v280_v15 = vld [vmem:[#allocation2] sm:$0xff] }
  0x30   : > { %v283_v18 = vld [vmem:[#allocation2 + $0x18] sm:$0xff]  ;;  %v281_v21 = vld [vmem:[#allocation2 + $0x8] sm:$0xff] }
  0x32   : > { %532 = vmatmul.mubr.msk.bf16.vlgmr.msra.gmra.mxu0 %vm296_vm1, %v289_v12 }
  0xf2   : > { %v533_v14 = vpop.f32.mrf.mxu0 }
  0xf3   : > { %v354_v16 = vadd.f32 %v533_v14, %v282_v13 }
  0xf4   : > { %v337_v17 = vpop.f32.mrf.mxu0 }
  0xf5   : > { %359 = vst.msk [vmem:[#allocation2 + $0x10] sm:$0xff] %vm275_vm0, %v354_v16  ;;  %v352_v19 = vadd.f32 %v337_v17, %v280_v15 }
  0xf6   : > { %v534_v20 = vpop.f32.mrf.mxu0 }
  0xf7   : > { %357 = vst.msk [vmem:[#allocation2] sm:$0xff] %vm275_vm0, %v352_v19  ;;  %v355_v22 = vadd.f32 %v534_v20, %v283_v18 }
  0xf8   : > { %v340_v23 = vpop.f32.mrf.mxu0 }
  0xf9   : > { %360 = vst.msk [vmem:[#allocation2 + $0x18] sm:$0xff] %vm275_vm0, %v355_v22  ;;  %v353_v24 = vadd.f32 %v340_v23, %v281_v21 }
  0xfb   : > { %358 = vst.msk [vmem:[#allocation2 + $0x8] sm:$0xff] %vm275_vm0, %v353_v24 }
  0xfc   : > { %v366_v28 = vld [vmem:[#allocation2 + $0x10] sm:$0xff] }
  0xfd   : > { %v377_v32 = vadd.f32 %v519_v25, %v366_v28 }
  0xfe   : > { %v364_v26 = vld [vmem:[#allocation2] sm:$0xff] }
  0xff   : > { %v375_v27 = vadd.f32 %v519_v25, %v364_v26  ;;  %381 = vst.msk [vmem:[%s268_s11 + $0x10] sm:$0xff] %vm275_vm0, %v377_v32 }
 0x100   : > { %v367_v29 = vld [vmem:[#allocation2 + $0x18] sm:$0xff] }
 0x101   : > { %379 = vst.msk [vmem:[%s268_s11] sm:$0xff] %vm275_vm0, %v375_v27  ;;  %v378_v33 = vadd.f32 %v519_v25, %v367_v29 }
 0x102   : > { %v365_v30 = vld [vmem:[#allocation2 + $0x8] sm:$0xff] }
 0x103   : > { %v376_v31 = vadd.f32 %v519_v25, %v365_v30  ;;  %382 = vst.msk [vmem:[%s268_s11 + $0x18] sm:$0xff] %vm275_vm0, %v378_v33 }
 0x105   : > { %380 = vst.msk [vmem:[%s268_s11 + $0x8] sm:$0xff] %vm275_vm0, %v376_v31 }
 0x106 PF: > { %s16_s17 = sadd.s32 1, %s671_s17   ;;  %s826_s12 = smov %s655_s13 }
 0x107   : > { %p13_p8 = scmp.ge.s32.totalorder %s16_s17, 4   ;;  %s827_s13 = smov %s659_s14 }
 0x108   : > { %s828_s14 = smov %s746_s24  ;;  %s829_s15 = smov %s667_s16 }
 0x109   : > { %s830_s16 = smov %s832_s19  ;;  %15 = sbr.rel (!%p13_p8) target bundleno = 4 (0x4), region = 86 }
 0x10e   :  { %411 = vsyncpa [#allocation4], 1 }
 0x10f   :  { %413 = vsyncpa [#allocation4 + $0x1], 1 }

// kernel: _lambda_.12
= control target key start
LH: loop header
LB: loop body
LE: loop exit
PB: predicated region body
PF: predicated region fallthrough
CT: control target
= control target key end

     0   :  { %s581_s12 = smov 0   ;;  %s583_s13 = smov 0   ;;  %s644_s0 = inlined_call_operand.vmem [shape: f32[64,32], index: 0, kind: input, shape index: {}]   ;;  %s645_s1 = inlined_call_operand.vmem [shape: f32[32,96], index: 1, kind: input, shape index: {}]   ;;  %s646_s2 = inlined_call_operand.vmem [shape: f32[1,96], index: 2, kind: input, shape index: {}]   ;;  %s647_s3 = inlined_call_operand.vmem [shape: f32[64,96], index: 3, kind: output, shape index: {}]  }
   0x1   :  { %s585_s14 = smov 0  }
   0x2 LB: > { %s32_s15 = sadd.s32 1, %s554_s13  ;;  %p489_p0 = scmp.ge.s32.totalorder %s558_s14, 1  ;;  %s558_s14 = sphi %s585_s14, %s13_s14   ;;  %s554_s13 = sphi %s583_s13, %s649_s13   ;;  %s550_s12 = sphi %s581_s12, %s648_s12  }
   0x3   : > { %p34_p1 = scmp.ge.s32.totalorder %s32_s15, 2  ;;  %p188_p2 = scmp.lt.s32.totalorder %s558_s14, 3 }
   0x5   : > { %s651_s15 = smov (%p34_p1, %s32_s15), 0  ;;  %p189_p3 = pnand %p489_p0, %p188_p2 }
   0x6   : > { %s490_s22 = sshll.u32 (!%p189_p3), %s550_s12, 2 }
   0x7   : > { %192 = sbr.rel (%p189_p3) target bundleno = 235 (0xeb), region = 32  ;;  %p230_p4 = scmp.lt.s32.totalorder (!%p189_p3), %s490_s22, 7 }
   0xc   : > { %v281_v0 = vld [vmem:[%s645_s1 + $0x10] sm:$0xff]  ;;  %v282_v1 = vld [vmem:[%s645_s1 + $0x18] sm:$0xff]  ;;  %v279_v2 = vld [vmem:[%s645_s1] sm:$0xff]  ;;  %vm264_vm0 = vcmask 785408   ;;  %v560_v6 = vmov 0.0   ;;  %s653_s22 = smov (!%p230_p4, %s490_s22), 7 }
   0xd   : > { %v284_v3 = vpack.c.bf16 %v282_v1, %v281_v0  ;;  %v280_v4 = vld [vmem:[%s645_s1 + $0x8] sm:$0xff]  ;;  %267 = vst.msk [vmem:[#allocation2 + $0x10] sm:$0xff] %vm264_vm0, %v560_v6  ;;  %265 = vst.msk [vmem:[#allocation2] sm:$0xff] %vm264_vm0, %v560_v6  ;;  %s491_s25 = sshll.u32 %s653_s22, 3  ;;  %vm285_vm1 = vcmask 261120  }
   0xe   : > { %v283_v5 = vpack.c.bf16 %v280_v4, %v279_v2  ;;  %266 = vst.msk [vmem:[#allocation2 + $0x8] sm:$0xff] %vm264_vm0, %v560_v6  ;;  %268 = vst.msk [vmem:[#allocation2 + $0x18] sm:$0xff] %vm264_vm0, %v560_v6  ;;  %s236_s28 = scalar_lea.vmem %s644_s0, %s491_s25  ;;  %s257_s4 = scalar_lea.vmem %s647_s3, %s491_s25  ;;  %v496_v25 = vld [vmem:[%s646_s2] ss:$0 sm:$0xff] }
   0xf   : > { %503 = vmatprep.subr.bf16.mxu0 %v284_v3  ;;  %v273_v7 = vld [vmem:[%s236_s28] sm:$0xff]  ;;  %v274_v8 = vld [vmem:[%s236_s28 + $0x8] sm:$0xff]  ;;  %v275_v9 = vld [vmem:[%s236_s28 + $0x10] sm:$0xff] }
  0x10   : > { %504 = vmatpush3.bf16.msra.mxu0 %v284_v3  ;;  %v277_v10 = vpack.c.bf16 %v274_v8, %v273_v7  ;;  %v276_v11 = vld [vmem:[%s236_s28 + $0x18] sm:$0xff] }
  0x11   : > { %505 = vmatprep.subr.bf16.mxu0 %v283_v5  ;;  %v278_v12 = vpack.c.bf16 %v276_v11, %v275_v9 }
  0x12   : > { %507 = vmatprep.mubr.msk.bf16.mxu0 %vm285_vm1, %v277_v10 }
  0x14   : > { %506 = vmatpush3.bf16.msra.mxu0 %v283_v5  ;;  %v271_v13 = vld [vmem:[#allocation2 + $0x10] sm:$0xff]  ;;  %v269_v15 = vld [vmem:[#allocation2] sm:$0xff] }
  0x15   : > { %v272_v18 = vld [vmem:[#allocation2 + $0x18] sm:$0xff]  ;;  %v270_v21 = vld [vmem:[#allocation2 + $0x8] sm:$0xff] }
  0x17   : > { %508 = vmatmul.mubr.msk.bf16.vlgmr.msra.gmra.mxu0 %vm285_vm1, %v278_v12 }
  0xd7   : > { %v509_v14 = vpop.f32.mrf.mxu0 }
  0xd8   : > { %v343_v16 = vadd.f32 %v509_v14, %v271_v13 }
  0xd9   : > { %v326_v17 = vpop.f32.mrf.mxu0 }
  0xda   : > { %348 = vst.msk [vmem:[#allocation2 + $0x10] sm:$0xff] %vm264_vm0, %v343_v16  ;;  %v341_v19 = vadd.f32 %v326_v17, %v269_v15 }
  0xdb   : > { %v510_v20 = vpop.f32.mrf.mxu0 }
  0xdc   : > { %346 = vst.msk [vmem:[#allocation2] sm:$0xff] %vm264_vm0, %v341_v19  ;;  %v344_v22 = vadd.f32 %v510_v20, %v272_v18 }
  0xdd   : > { %v329_v23 = vpop.f32.mrf.mxu0 }
  0xde   : > { %349 = vst.msk [vmem:[#allocation2 + $0x18] sm:$0xff] %vm264_vm0, %v344_v22  ;;  %v342_v24 = vadd.f32 %v329_v23, %v270_v21 }
  0xe0   : > { %347 = vst.msk [vmem:[#allocation2 + $0x8] sm:$0xff] %vm264_vm0, %v342_v24 }
  0xe1   : > { %v355_v28 = vld [vmem:[#allocation2 + $0x10] sm:$0xff] }
  0xe2   : > { %v366_v32 = vadd.f32 %v496_v25, %v355_v28 }
  0xe3   : > { %v353_v26 = vld [vmem:[#allocation2] sm:$0xff] }
  0xe4   : > { %v364_v27 = vadd.f32 %v496_v25, %v353_v26  ;;  %370 = vst.msk [vmem:[%s257_s4 + $0x10] sm:$0xff] %vm264_vm0, %v366_v32 }
  0xe5   : > { %v356_v29 = vld [vmem:[#allocation2 + $0x18] sm:$0xff] }
  0xe6   : > { %368 = vst.msk [vmem:[%s257_s4] sm:$0xff] %vm264_vm0, %v364_v27  ;;  %v367_v33 = vadd.f32 %v496_v25, %v356_v29 }
  0xe7   : > { %v354_v30 = vld [vmem:[#allocation2 + $0x8] sm:$0xff] }
  0xe8   : > { %v365_v31 = vadd.f32 %v496_v25, %v354_v30  ;;  %371 = vst.msk [vmem:[%s257_s4 + $0x18] sm:$0xff] %vm264_vm0, %v367_v33 }
  0xea   : > { %369 = vst.msk [vmem:[%s257_s4 + $0x8] sm:$0xff] %vm264_vm0, %v365_v31 }
  0xeb PF: > { %s13_s14 = sadd.s32 1, %s558_s14   ;;  %s648_s12 = smov %s554_s13 }
  0xec   : > { %p10_p5 = scmp.ge.s32.totalorder %s13_s14, 4   ;;  %s649_s13 = smov %s651_s15 }
  0xee   :  { %12 = sbr.rel (!%p10_p5) target bundleno = 2 (0x2), region = 76 }

// kernel: _lambda_.9
= control target key start
LH: loop header
LB: loop body
LE: loop exit
PB: predicated region body
PF: predicated region fallthrough
CT: control target
= control target key end

     0   :  { %s1013_s15 = smov 0   ;;  %s1015_s16 = smov 0   ;;  %s1142_s0 = inlined_call_operand.vmem [shape: f32[8,32,8], index: 0, kind: input, shape index: {}]   ;;  %s1143_s1 = inlined_call_operand.vmem [shape: f32[8,32,8], index: 1, kind: input, shape index: {}]   ;;  %s1144_s2 = inlined_call_operand.vmem [shape: f32[8,32,8], index: 2, kind: input, shape index: {}]   ;;  %s1145_s3 = inlined_call_operand.vmem [shape: f32[32,32], index: 3, kind: input, shape index: {}]   ;;  %s1146_s4 = inlined_call_operand.vmem [shape: f32[8,32,8], index: 4, kind: output, shape index: {}]  }
   0x1   :  { %s1017_s17 = smov 0  }
   0x2 LB: > { %s33_s18 = sadd.s32 1, %s979_s16  ;;  %p863_p0 = scmp.ge.s32.totalorder %s983_s17, 1  ;;  %s983_s17 = sphi %s1017_s17, %s14_s17   ;;  %s979_s16 = sphi %s1015_s16, %s1148_s16   ;;  %s975_s15 = sphi %s1013_s15, %s1147_s15  }
   0x3   : > { %p35_p1 = scmp.ge.s32.totalorder %s33_s18, 8  ;;  %p240_p2 = scmp.lt.s32.totalorder %s983_s17, 9 }
   0x5   : > { %s1150_s18 = smov (%p35_p1, %s33_s18), 0  ;;  %p241_p3 = pnand %p863_p0, %p240_p2 }
   0x6   : > { %p301_p4 = scmp.lt.s32.totalorder (!%p241_p3), %s975_s15, 7 }
   0x7   : > { %244 = sbr.rel (%p241_p3) target bundleno = 814 (0x32e), region = 36 }
   0xc   : > { %s1152_s15 = smov (!%p301_p4, %s975_s15), 7  ;;  %vm363_vm0 = vcmask 64512   ;;  %vm354_vm1 = vcmask 7168   ;;  %v985_v18 = vmov -inf   ;;  %v451_v19 = vlaneseq  ;;  %v386_v23 = vld [vmem:[%s1145_s3 + $0x10] sm:$0xff]  ;;  %v384_v25 = vld [vmem:[%s1145_s3] sm:$0xff] }
   0xd   : > { %s1031_s19 = sshll.u32 %s1152_s15, 5  ;;  %357 = vst.msk [vmem:[#allocation2 + $0x10] sm:$0xff] %vm354_vm1, %v985_v18  ;;  %355 = vst.msk [vmem:[#allocation2] sm:$0xff] %vm354_vm1, %v985_v18  ;;  %vm478_vm3 = vcmask 261120   ;;  %v387_v29 = vld [vmem:[%s1145_s3 + $0x18] sm:$0xff]  ;;  %v385_v35 = vld [vmem:[%s1145_s3 + $0x8] sm:$0xff] }
   0xe   : > { %s318_s22 = scalar_lea.vmem %s1143_s1, %s1031_s19  ;;  %s308_s25 = scalar_lea.vmem %s1142_s0, %s1031_s19  ;;  %356 = vst.msk [vmem:[#allocation2 + $0x8] sm:$0xff] %vm354_vm1, %v985_v18  ;;  %358 = vst.msk [vmem:[#allocation2 + $0x18] sm:$0xff] %vm354_vm1, %v985_v18  ;;  %v452_v20 = vshrl.u32 %v451_v19, 7  ;;  %v463_v22 = vand.u32 127, %v451_v19  ;;  %v986_v45 = vmov 0   ;;  %v987_v46 = vmov 0.0  }
   0xf   : > { %v380_v0 = vld [vmem:[%s318_s22 + $0x10] sm:$0xff]  ;;  %v381_v1 = vld [vmem:[%s318_s22 + $0x18] sm:$0xff]  ;;  %v378_v2 = vld [vmem:[%s318_s22] sm:$0xff]  ;;  %936 = vset.pattern.permute.xlu1 %v986_v45  ;;  %935 = vset.pattern.permute.xlu0 %v986_v45  ;;  %359 = vst.msk [vmem:[#allocation3] sm:$0xff] %vm354_vm1, %v987_v46  ;;  %s328_s10 = scalar_lea.vmem %s1144_s2, %s1031_s19  ;;  %s347_s13 = scalar_lea.vmem %s1146_s4, %s1031_s19 }
  0x10   : > { %v383_v3 = vpack.c.bf16 %v381_v1, %v380_v0  ;;  %v379_v4 = vld [vmem:[%s318_s22 + $0x8] sm:$0xff]  ;;  %v368_v5 = vld [vmem:[%s308_s25] sm:$0xff]  ;;  %v370_v12 = vld [vmem:[%s308_s25 + $0x10] sm:$0xff]  ;;  %v454_v21 = vadd.s32 16, %v452_v20  ;;  %v455_v26 = vadd.s32 24, %v452_v20  ;;  %vm466_vm4 = vcmp.ge.s32.totalorder %v452_v20, %v463_v22  ;;  %360 = vst.msk [vmem:[#allocation3 + $0x8] sm:$0xff] %vm354_vm1, %v987_v46 }
  0x11   : > { %v369_v6 = vld [vmem:[%s308_s25 + $0x8] sm:$0xff]  ;;  %v382_v7 = vpack.c.bf16 %v379_v4, %v378_v2  ;;  %v372_v8 = vmul.f32 0.35355338, %v368_v5  ;;  %v371_v13 = vld [vmem:[%s308_s25 + $0x18] sm:$0xff]  ;;  %v374_v15 = vmul.f32 0.35355338, %v370_v12 }
  0x12   : > { %v373_v9 = vmul.f32 0.35355338, %v369_v6  ;;  %906 = vmatprep.subr.msk.bf16.mxu0 %vm363_vm0, %v383_v3  ;;  %v399_v10 = vsel %vm363_vm0, %v383_v3, 0  ;;  %v375_v16 = vmul.f32 0.35355338, %v371_v13  ;;  %vm468_vm2 = vcmp.ge.s32.totalorder %v454_v21, %v463_v22  ;;  %361 = vst.msk [vmem:[#allocation3 + $0x10] sm:$0xff] %vm354_vm1, %v987_v46 }
  0x13   : > { %891 = vmatpush3.bf16.xpose.msra.mxu0 %v399_v10  ;;  %v396_v14 = vsel %vm363_vm0, %v382_v7, 0  ;;  %v453_v30 = vadd.s32 8, %v452_v20  ;;  %vm469_vm5 = vcmp.ge.s32.totalorder %v455_v26, %v463_v22  ;;  %362 = vst.msk [vmem:[#allocation3 + $0x18] sm:$0xff] %vm354_vm1, %v987_v46  ;;  %v600_v63 = vld [vmem:[%s328_s10 + $0x10] sm:$0xff]  ;;  %v601_v0 = vld [vmem:[%s328_s10 + $0x18] sm:$0xff]  ;;  %v598_v2 = vld [vmem:[%s328_s10] sm:$0xff] }
  0x14   : > { %v376_v11 = vpack.c.bf16 %v373_v9, %v372_v8  ;;  %907 = vmatprep.subr.msk.bf16.mxu0 %vm363_vm0, %v382_v7  ;;  %v377_v17 = vpack.c.bf16 %v375_v16, %v374_v15  ;;  %364 = vst.msk [vmem:[#allocation4] sm:$0xff] %vm363_vm0, %v987_v46  ;;  %365 = vst.msk [vmem:[#allocation4 + $0x8] sm:$0xff] %vm363_vm0, %v987_v46  ;;  %v1084_v47 = vld [vmem:[#allocation2 + $0x10] sm:$0xff]  ;;  %v474_v49 = vld [vmem:[#allocation2] sm:$0xff]  ;;  %v603_v1 = vpack.c.bf16 %v601_v0, %v600_v63 }
  0x15   : > { %vm467_vm6 = vcmp.ge.s32.totalorder %v453_v30, %v463_v22  ;;  %366 = vst.msk [vmem:[#allocation4 + $0x10] sm:$0xff] %vm363_vm0, %v987_v46  ;;  %367 = vst.msk [vmem:[#allocation4 + $0x18] sm:$0xff] %vm363_vm0, %v987_v46  ;;  %v1089_v52 = vld [vmem:[#allocation2 + $0x18] sm:$0xff]  ;;  %v475_v56 = vld [vmem:[#allocation2 + $0x8] sm:$0xff] }
  0x16   : > { %894 = vmatprep.mubr.msk.bf16.mxu0 %vm363_vm0, %v376_v11  ;;  %898 = vmatprep.subr.bf16.mxu1 %v603_v1  ;;  %v599_v3 = vld [vmem:[%s328_s10 + $0x8] sm:$0xff] }
  0x17   : > { %899 = vmatpush3.bf16.msra.mxu1 %v603_v1  ;;  %v602_v4 = vpack.c.bf16 %v599_v3, %v598_v2 }
  0x19   : > { %900 = vmatprep.subr.bf16.mxu1 %v602_v4 }
  0x1a   : > { %v542_v45 = vld [vmem:[#allocation3 + $0x18] sm:$0xff] }
  0x1b   : > { %893 = vmatpush3.bf16.xpose.msra.mxu0 %v396_v14  ;;  %901 = vmatpush3.bf16.msra.mxu1 %v602_v4 }
  0x1c   : > { %v571_v0 = vld [vmem:[#allocation4 + $0x18] sm:$0xff] }
  0x22   : > { %895 = vmatmul.mubr.msk.bf16.vlgmr.msra.gmra.mxu0 %vm363_vm0, %v377_v17 }
  0xe2   : > { %v896_v24 = vpop.f32.mrf.mxu0 }
  0xe3   : > { %v444_v27 = vadd.f32 %v896_v24, %v386_v23 }
  0xe4   : > { %v435_v28 = vpop.f32.mrf.mxu0 }
  0xe5   : > { %v436_v31 = vadd.f32 %v435_v28, %v384_v25  ;;  %v1060_v32 = vsel %vm468_vm2, %v444_v27, -3.4028235e+38 }
  0xe6   : > { %v897_v33 = vpop.f32.mrf.mxu0  ;;  %v485_v34 = vsel %vm478_vm3, %v1060_v32, -inf }
  0xe7   : > { %v447_v36 = vadd.f32 %v897_v33, %v387_v29  ;;  %486 = vmax.xlane.f32.xlu1 %v485_v34  ;;  %v1067_v37 = vsel %vm466_vm4, %v436_v31, -3.4028235e+38 }
  0xe8   : > { %v438_v38 = vpop.f32.mrf.mxu0  ;;  %v479_v39 = vsel %vm478_vm3, %v1067_v37, -inf }
  0xe9   : > { %v439_v40 = vadd.f32 %v438_v38, %v385_v35  ;;  %480 = vmax.xlane.f32.xlu0 %v479_v39  ;;  %v1071_v41 = vsel %vm469_vm5, %v447_v36, -3.4028235e+38  ;;  %v539_v35 = vld [vmem:[#allocation3] sm:$0xff]  ;;  %v541_v38 = vld [vmem:[#allocation3 + $0x10] sm:$0xff]  ;;  %v540_v39 = vld [vmem:[#allocation3 + $0x8] sm:$0xff] }
  0xea   : > { %v488_v42 = vsel %vm478_vm3, %v1071_v41, -inf }
  0xeb   : > { %489 = vmax.xlane.f32.xlu1 %v488_v42  ;;  %v471_v43 = vsel %vm467_vm6, %v439_v40, -3.4028235e+38 }
  0xec   : > { %v482_v44 = vsel %vm478_vm3, %v471_v43, -inf }
  0xed   : > { %483 = vmax.xlane.f32.xlu0 %v482_v44 }
 0x170   : > { %v487_v48 = vpop.xlane.xlu1 %486 }
 0x171   : > { %v1087_v50 = vmax.f32 %v1084_v47, %v487_v48 }
 0x172   : > { %v481_v51 = vpop.xlane.xlu0 %480 }
 0x173   : > { %v497_v53 = vsub.f32 %v1084_v47, %v1087_v50  ;;  %669 = vst.msk [vmem:[#allocation2 + $0x10] sm:$0xff] %vm354_vm1, %v1087_v50  ;;  %v491_v54 = vmax.f32 %v474_v49, %v481_v51  ;;  %519 = vperm.xlu1 %936, %v1087_v50  }
 0x174   : > { %v490_v55 = vpop.xlane.xlu1 %489 }
 0x175   : > { %v495_v57 = vsub.f32 %v474_v49, %v491_v54  ;;  %667 = vst.msk [vmem:[#allocation2] sm:$0xff] %vm354_vm1, %v491_v54  ;;  %v494_v58 = vmax.f32 %v1089_v52, %v490_v55  ;;  %509 = vperm.xlu0 %935, %v491_v54   ;;  %v503_v29 = vmul.f32 1.442695, %v497_v53 }
 0x176   : > { %v484_v59 = vpop.xlane.xlu0 %483 }
 0x177   : > { %v498_v60 = vsub.f32 %v1089_v52, %v494_v58  ;;  %670 = vst.msk [vmem:[#allocation2 + $0x18] sm:$0xff] %vm354_vm1, %v494_v58  ;;  %v492_v61 = vmax.f32 %v475_v56, %v484_v59  ;;  %v499_v25 = vmul.f32 1.442695, %v495_v57 }
 0x179   : > { %v496_v62 = vsub.f32 %v475_v56, %v492_v61  ;;  %668 = vst.msk [vmem:[#allocation2 + $0x8] sm:$0xff] %vm354_vm1, %v492_v61  ;;  %514 = vperm.xlu1 %936, %v492_v61   ;;  %v505_v30 = vmul.f32 1.442695, %v498_v60  ;;  %v570_v61 = vld [vmem:[#allocation4 + $0x10] sm:$0xff] }
 0x17b   : > { %v501_v28 = vmul.f32 1.442695, %v496_v62  ;;  %v568_v62 = vld [vmem:[#allocation4] sm:$0xff] }
 0x17d   : > { %524 = vperm.xlu1 %936, %v494_v58  }
 0x1ee   : > { %v520_v5 = vpop.permute.xlu1 %519 }
 0x1ef   : > { %v529_v6 = vsub.f32 %v1060_v32, %v520_v5  ;;  %v569_v5 = vld [vmem:[#allocation4 + $0x8] sm:$0xff] }
 0x1f0   : > { %v510_v7 = vpop.permute.xlu0 %509 }
 0x1f1   : > { %v527_v8 = vsub.f32 %v1067_v37, %v510_v7  ;;  %v535_v9 = vmul.f32 1.442695, %v529_v6 }
 0x1f3   : > { %v531_v10 = vmul.f32 1.442695, %v527_v8 }
 0x1f4   : > { %v515_v11 = vpop.permute.xlu1 %514 }
 0x1f5   : > { %937 = vpow2.f32 %v531_v10  ;;  %v528_v12 = vsub.f32 %v471_v43, %v515_v11 }
 0x1f6   : > { %939 = vpow2.f32 %v535_v9 }
 0x1f7   : > { %v533_v13 = vmul.f32 1.442695, %v528_v12 }
 0x1f8   : > { %v525_v14 = vpop.permute.xlu1 %524 }
 0x1f9   : > { %941 = vpow2.f32 %v533_v13  ;;  %v530_v15 = vsub.f32 %v1071_v41, %v525_v14 }
 0x1fb   : > { %v537_v16 = vmul.f32 1.442695, %v530_v15 }
 0x1fd   : > { %943 = vpow2.f32 %v537_v16 }
 0x1fe   : > { %945 = vpow2.f32 %v499_v25 }
 0x1ff   : > { %947 = vpow2.f32 %v501_v28 }
 0x200   : > { %949 = vpow2.f32 %v503_v29 }
 0x201   : > { %951 = vpow2.f32 %v505_v30 }
 0x202   : > { %v938_v17 = vpop.eup %937 }
 0x203   : > { %v547_v18 = vsel %vm478_vm3, %v938_v17, 0.0  ;;  %v940_v19 = vpop.eup %939 }
 0x204   : > { %548 = vadd.xlane.f32.xlu1 %v547_v18  ;;  %v553_v22 = vsel %vm478_vm3, %v940_v19, 0.0 }
 0x206   : > { %v942_v20 = vpop.eup %941 }
 0x207   : > { %v550_v21 = vsel %vm478_vm3, %v942_v20, 0.0  ;;  %v596_v23 = vpack.c.bf16 %v942_v20, %v938_v17 }
 0x208   : > { %551 = vadd.xlane.f32.xlu0 %v550_v21  ;;  %554 = vadd.xlane.f32.xlu1 %v553_v22 }
 0x209   : > { %902 = vmatprep.mubr.msk.bf16.mxu1 %vm478_vm3, %v596_v23 }
 0x20a   : > { %v944_v24 = vpop.eup %943 }
 0x20b   : > { %v556_v26 = vsel %vm478_vm3, %v944_v24, 0.0  ;;  %v597_v27 = vpack.c.bf16 %v944_v24, %v940_v19  ;;  %v946_v31 = vpop.eup %945 }
 0x20c   : > { %557 = vadd.xlane.f32.xlu1 %v556_v26  ;;  %v948_v32 = vpop.eup %947  ;;  %v543_v36 = vmul.f32 %v946_v31, %v539_v35 }
 0x20d   : > { %903 = vmatmul.mubr.msk.bf16.vlgmr.msra.gmra.mxu1 %vm478_vm3, %v597_v27  ;;  %v950_v33 = vpop.eup %949  ;;  %v544_v42 = vmul.f32 %v948_v32, %v540_v39 }
 0x20e   : > { %v952_v34 = vpop.eup %951  ;;  %v545_v41 = vmul.f32 %v950_v33, %v541_v38 }
 0x20f   : > { %v546_v48 = vmul.f32 %v952_v34, %v542_v45 }
 0x21d   : > { %574 = vperm.xlu1 %936, %v946_v31  }
 0x21e   : > { %579 = vperm.xlu0 %935, %v948_v32  }
 0x221   : > { %584 = vperm.xlu1 %936, %v950_v33  }
 0x225   : > { %589 = vperm.xlu1 %936, %v952_v34  }
 0x28d   : > { %v549_v37 = vpop.xlane.xlu1 %548 }
 0x28e   : > { %v559_v40 = vadd.f32 %v549_v37, %v543_v36 }
 0x290   : > { %564 = vst.msk [vmem:[#allocation3] sm:$0xff] %vm354_vm1, %v559_v40 }
 0x291   : > { %v555_v43 = vpop.xlane.xlu1 %554  ;;  %v552_v44 = vpop.xlane.xlu0 %551 }
 0x292   : > { %v561_v46 = vadd.f32 %v555_v43, %v545_v41  ;;  %v560_v47 = vadd.f32 %v552_v44, %v544_v42 }
 0x294   : > { %566 = vst.msk [vmem:[#allocation3 + $0x10] sm:$0xff] %vm354_vm1, %v561_v46  ;;  %565 = vst.msk [vmem:[#allocation3 + $0x8] sm:$0xff] %vm354_vm1, %v560_v47 }
 0x295   : > { %v558_v49 = vpop.xlane.xlu1 %557 }
 0x296   : > { %v562_v50 = vadd.f32 %v558_v49, %v546_v48 }
 0x297   : > { %v678_v51 = vld [vmem:[#allocation3] sm:$0xff] }
 0x298   : > { %567 = vst.msk [vmem:[#allocation3 + $0x18] sm:$0xff] %vm354_vm1, %v562_v50  ;;  %953 = vrcp.f32 %v678_v51 }
 0x299   : > { %v575_v59 = vpop.permute.xlu1 %574  ;;  %v580_v6 = vpop.permute.xlu0 %579 }
 0x29a   : > { %v592_v3 = vmul.f32 %v575_v59, %v568_v62  ;;  %v593_v11 = vmul.f32 %v580_v6, %v569_v5 }
 0x29b   : > { %v680_v52 = vld [vmem:[#allocation3 + $0x10] sm:$0xff]  ;;  %v679_v53 = vld [vmem:[#allocation3 + $0x8] sm:$0xff] }
 0x29c   : > { %955 = vrcp.f32 %v680_v52 }
 0x29d   : > { %957 = vrcp.f32 %v679_v53  ;;  %v585_v60 = vpop.permute.xlu1 %584 }
 0x29e   : > { %v594_v63 = vmul.f32 %v585_v60, %v570_v61 }
 0x29f   : > { %v681_v54 = vld [vmem:[#allocation3 + $0x18] sm:$0xff] }
 0x2a0   : > { %959 = vrcp.f32 %v681_v54 }
 0x2a1   : > { %v590_v1 = vpop.permute.xlu1 %589 }
 0x2a2   : > { %v595_v8 = vmul.f32 %v590_v1, %v571_v0 }
 0x2a5   : > { %v954_v55 = vpop.eup %953 }
 0x2a6   : > { %688 = vperm.xlu1 %936, %v954_v55  }
 0x2a9   : > { %v956_v56 = vpop.eup %955 }
 0x2aa   : > { %v958_v57 = vpop.eup %957  ;;  %698 = vperm.xlu1 %936, %v956_v56  }
 0x2ab   : > { %693 = vperm.xlu0 %935, %v958_v57  }
 0x2ad   : > { %v960_v58 = vpop.eup %959 }
 0x2af   : > { %703 = vperm.xlu0 %935, %v960_v58  }
 0x2cd   : > { %v904_v2 = vpop.f32.mrf.mxu1 }
 0x2ce   : > { %v661_v4 = vadd.f32 %v904_v2, %v594_v63 }
 0x2cf   : > { %v644_v7 = vpop.f32.mrf.mxu1 }
 0x2d0   : > { %665 = vst.msk [vmem:[#allocation4 + $0x10] sm:$0xff] %vm363_vm0, %v661_v4  ;;  %v659_v9 = vadd.f32 %v644_v7, %v592_v3 }
 0x2d1   : > { %v905_v10 = vpop.f32.mrf.mxu1 }
 0x2d2   : > { %663 = vst.msk [vmem:[#allocation4] sm:$0xff] %vm363_vm0, %v659_v9  ;;  %v662_v12 = vadd.f32 %v905_v10, %v595_v8 }
 0x2d3   : > { %v647_v13 = vpop.f32.mrf.mxu1 }
 0x2d4   : > { %666 = vst.msk [vmem:[#allocation4 + $0x18] sm:$0xff] %vm363_vm0, %v662_v12  ;;  %v660_v14 = vadd.f32 %v647_v13, %v593_v11 }
 0x2d6   : > { %664 = vst.msk [vmem:[#allocation4 + $0x8] sm:$0xff] %vm363_vm0, %v660_v14 }
 0x2d7   : > { %v676_v18 = vld [vmem:[#allocation4 + $0x10] sm:$0xff] }
 0x2d9   : > { %v674_v15 = vld [vmem:[#allocation4] sm:$0xff] }
 0x2db   : > { %v677_v24 = vld [vmem:[#allocation4 + $0x18] sm:$0xff] }
 0x2dd   : > { %v675_v21 = vld [vmem:[#allocation4 + $0x8] sm:$0xff] }
 0x321   : > { %v689_v16 = vpop.permute.xlu1 %688 }
 0x322   : > { %v706_v17 = vmul.f32 %v689_v16, %v674_v15 }
 0x324   : > { %710 = vst.msk [vmem:[%s347_s13] sm:$0xff] %vm363_vm0, %v706_v17 }
 0x325   : > { %v699_v19 = vpop.permute.xlu1 %698 }
 0x326   : > { %v708_v20 = vmul.f32 %v699_v19, %v676_v18  ;;  %v694_v22 = vpop.permute.xlu0 %693 }
 0x327   : > { %v707_v23 = vmul.f32 %v694_v22, %v675_v21 }
 0x328   : > { %712 = vst.msk [vmem:[%s347_s13 + $0x10] sm:$0xff] %vm363_vm0, %v708_v20 }
 0x329   : > { %711 = vst.msk [vmem:[%s347_s13 + $0x8] sm:$0xff] %vm363_vm0, %v707_v23 }
 0x32a   : > { %v704_v25 = vpop.permute.xlu0 %703 }
 0x32b   : > { %v709_v26 = vmul.f32 %v704_v25, %v677_v24 }
 0x32d   : > { %713 = vst.msk [vmem:[%s347_s13 + $0x18] sm:$0xff] %vm363_vm0, %v709_v26 }
 0x32e PF: > { %s14_s17 = sadd.s32 1, %s983_s17   ;;  %s1147_s15 = smov %s979_s16 }
 0x32f   : > { %p11_p5 = scmp.ge.s32.totalorder %s14_s17, 10   ;;  %s1148_s16 = smov %s1150_s18 }
 0x331   :  { %13 = sbr.rel (!%p11_p5) target bundleno = 2 (0x2), region = 83 }

// kernel: _lambda_.10
= control target key start
LH: loop header
LB: loop body
LE: loop exit
PB: predicated region body
PF: predicated region fallthrough
CT: control target
= control target key end

     0   :  { %s645_s21 = smov 0   ;;  %s705_s0 = inlined_call_operand.vmem [shape: f32[64,32], index: 0, kind: input, shape index: {}]   ;;  %s706_s1 = inlined_call_operand.vmem [shape: f32[64,32], index: 1, kind: input, shape index: {}]   ;;  %s707_s2 = inlined_call_operand.vmem [shape: f32[32,32], index: 2, kind: input, shape index: {}]   ;;  %s708_s3 = inlined_call_operand.vmem [shape: f32[1,32], index: 3, kind: input, shape index: {}]   ;;  %s709_s4 = inlined_call_operand.vmem [shape: f32[1,32], index: 4, kind: input, shape index: {}]   ;;  %s710_s5 = inlined_call_operand.vmem [shape: f32[1,32], index: 5, kind: input, shape index: {}]   ;;  %s711_s6 = inlined_call_operand.vmem [shape: f32[64,32], index: 6, kind: output, shape index: {}]  }
   0x1 LB: > { %s536_s22 = sadd.s32 4294967295, %s608_s21   ;;  %p540_p0 = scmp.ge.s32.totalorder %s608_s21, 1  ;;  %s608_s21 = sphi %s645_s21, %s16_s21  }
   0x2   : > { %p224_p1 = scmp.lt.s32.totalorder %s608_s21, 3 }
   0x4   : > { %p225_p2 = pnand %p540_p0, %p224_p1 }
   0x5   : > { %s541_s29 = sshll.u32 (!%p225_p2), %s536_s22, 2 }
   0x6   : > { %228 = sbr.rel (%p225_p2) target bundleno = 570 (0x23a), region = 44  ;;  %p260_p3 = scmp.lt.s32.totalorder (!%p225_p2), %s541_s29, 7 }
   0xb   : > { %v314_v0 = vld [vmem:[%s707_s2 + $0x10] sm:$0xff]  ;;  %v315_v1 = vld [vmem:[%s707_s2 + $0x18] sm:$0xff]  ;;  %v312_v2 = vld [vmem:[%s707_s2] sm:$0xff]  ;;  %s713_s29 = smov (!%p260_p3, %s541_s29), 7  ;;  %vm325_vm0 = vcmask 261120  }
   0xc   : > { %v317_v3 = vpack.c.bf16 %v315_v1, %v314_v0  ;;  %v313_v4 = vld [vmem:[%s707_s2 + $0x8] sm:$0xff]  ;;  %s665_s8 = sshll.u32 %s713_s29, 3  ;;  %v551_v32 = vld [vmem:[%s708_s3] ss:$0 sm:$0xff] }
   0xd   : > { %v316_v5 = vpack.c.bf16 %v313_v4, %v312_v2  ;;  %s263_s11 = scalar_lea.vmem %s705_s0, %s665_s8  ;;  %s269_s14 = scalar_lea.vmem %s706_s1, %s665_s8 }
   0xe   : > { %562 = vmatprep.subr.bf16.mxu0 %v317_v3  ;;  %v278_v6 = vld [vmem:[%s263_s11] sm:$0xff]  ;;  %v279_v7 = vld [vmem:[%s263_s11 + $0x8] sm:$0xff]  ;;  %v280_v8 = vld [vmem:[%s263_s11 + $0x10] sm:$0xff]  ;;  %s275_s24 = scalar_lea.vmem %s711_s6, %s665_s8 }
   0xf   : > { %563 = vmatpush3.bf16.msra.mxu0 %v317_v3  ;;  %v547_v9 = vmul.f32 -1.442695, %v278_v6  ;;  %v548_v10 = vmul.f32 -1.442695, %v279_v7  ;;  %v281_v11 = vld [vmem:[%s263_s11 + $0x18] sm:$0xff]  ;;  %v383_v34 = vld [vmem:[%s269_s14 + $0x10] sm:$0xff] }
  0x10   : > { %564 = vmatprep.subr.bf16.mxu0 %v316_v5  ;;  %v549_v12 = vmul.f32 -1.442695, %v280_v8  ;;  %v550_v13 = vmul.f32 -1.442695, %v281_v11  ;;  %v381_v37 = vld [vmem:[%s269_s14] sm:$0xff]  ;;  %v384_v41 = vld [vmem:[%s269_s14 + $0x18] sm:$0xff] }
  0x11   : > { %578 = vpow2.f32 %v547_v9  ;;  %v382_v46 = vld [vmem:[%s269_s14 + $0x8] sm:$0xff] }
  0x12   : > { %580 = vpow2.f32 %v548_v10 }
  0x13   : > { %565 = vmatpush3.bf16.msra.mxu0 %v316_v5  ;;  %582 = vpow2.f32 %v549_v12 }
  0x14   : > { %584 = vpow2.f32 %v550_v13 }
  0x1e   : > { %v579_v14 = vpop.eup %578 }
  0x1f   : > { %v581_v15 = vpop.eup %580  ;;  %v294_v16 = vadd.f32 1.0, %v579_v14 }
  0x20   : > { %v583_v17 = vpop.eup %582  ;;  %v295_v18 = vadd.f32 1.0, %v581_v15 }
  0x21   : > { %v585_v19 = vpop.eup %584  ;;  %586 = vrcp.f32 %v294_v16  ;;  %v296_v20 = vadd.f32 1.0, %v583_v17 }
  0x22   : > { %588 = vrcp.f32 %v295_v18  ;;  %v297_v21 = vadd.f32 1.0, %v585_v19 }
  0x23   : > { %590 = vrcp.f32 %v296_v20 }
  0x24   : > { %592 = vrcp.f32 %v297_v21 }
  0x2e   : > { %v587_v22 = vpop.eup %586 }
  0x2f   : > { %v589_v23 = vpop.eup %588  ;;  %v306_v24 = vmul.f32 %v587_v22, %v278_v6  ;;  %v554_v22 = vld [vmem:[%s709_s4] ss:$0 sm:$0xff] }
  0x30   : > { %v591_v25 = vpop.eup %590  ;;  %v307_v26 = vmul.f32 %v589_v23, %v279_v7 }
  0x31   : > { %v593_v27 = vpop.eup %592  ;;  %v308_v28 = vmul.f32 %v591_v25, %v280_v8 }
  0x32   : > { %v310_v29 = vpack.c.bf16 %v307_v26, %v306_v24  ;;  %v309_v30 = vmul.f32 %v593_v27, %v281_v11  ;;  %v555_v24 = vld [vmem:[%s710_s5] ss:$0 sm:$0xff] }
  0x34   : > { %566 = vmatprep.mubr.msk.bf16.mxu0 %vm325_vm0, %v310_v29  ;;  %v311_v31 = vpack.c.bf16 %v309_v30, %v308_v28 }
  0x36   : > { %567 = vmatmul.mubr.msk.bf16.vlgmr.msra.gmra.mxu0 %vm325_vm0, %v311_v31 }
  0xf6   : > { %v568_v33 = vpop.f32.mrf.mxu0 }
  0xf7   : > { %v375_v35 = vadd.f32 %v568_v33, %v551_v32 }
  0xf8   : > { %v366_v36 = vpop.f32.mrf.mxu0 }
  0xf9   : > { %v367_v38 = vadd.f32 %v551_v32, %v366_v36  ;;  %v387_v39 = vadd.f32 %v383_v34, %v375_v35 }
  0xfa   : > { %v569_v40 = vpop.f32.mrf.mxu0 }
  0xfb   : > { %v378_v42 = vadd.f32 %v569_v40, %v551_v32  ;;  %v395_v43 = vsel %vm325_vm0, %v387_v39, 0.0  ;;  %v385_v44 = vadd.f32 %v381_v37, %v367_v38 }
  0xfc   : > { %396 = vadd.xlane.f32.xlu1 %v395_v43  ;;  %v369_v45 = vpop.f32.mrf.mxu0 }
  0xfd   : > { %v370_v47 = vadd.f32 %v551_v32, %v369_v45  ;;  %v389_v48 = vsel %vm325_vm0, %v385_v44, 0.0  ;;  %v388_v49 = vadd.f32 %v384_v41, %v378_v42 }
  0xfe   : > { %390 = vadd.xlane.f32.xlu0 %v389_v48 }
  0xff   : > { %v398_v50 = vsel %vm325_vm0, %v388_v49, 0.0  ;;  %v386_v51 = vadd.f32 %v382_v46, %v370_v47 }
 0x100   : > { %399 = vadd.xlane.f32.xlu1 %v398_v50 }
 0x101   : > { %v392_v52 = vsel %vm325_vm0, %v386_v51, 0.0 }
 0x102   : > { %393 = vadd.xlane.f32.xlu0 %v392_v52 }
 0x185   : > { %v397_v53 = vpop.xlane.xlu1 %396 }
 0x186   : > { %v404_v54 = vmul.f32 0.03125, %v397_v53 }
 0x187   : > { %v391_v55 = vpop.xlane.xlu0 %390 }
 0x188   : > { %v402_v56 = vmul.f32 0.03125, %v391_v55  ;;  %v408_v58 = vsub.f32 %v387_v39, %v404_v54 }
 0x189   : > { %v400_v57 = vpop.xlane.xlu1 %399 }
 0x18a   : > { %v406_v59 = vsub.f32 %v385_v44, %v402_v56  ;;  %v405_v60 = vmul.f32 0.03125, %v400_v57  ;;  %v412_v3 = vmul.f32 %v408_v58, %v408_v58 }
 0x18b   : > { %v394_v61 = vpop.xlane.xlu0 %393 }
 0x18c   : > { %v403_v62 = vmul.f32 0.03125, %v394_v61  ;;  %v410_v63 = vmul.f32 %v406_v59, %v406_v59  ;;  %v409_v0 = vsub.f32 %v388_v49, %v405_v60  ;;  %v420_v5 = vsel %vm325_vm0, %v412_v3, 0.0 }
 0x18e   : > { %v407_v1 = vsub.f32 %v386_v51, %v403_v62  ;;  %v414_v2 = vsel %vm325_vm0, %v410_v63, 0.0  ;;  %v413_v7 = vmul.f32 %v409_v0, %v409_v0 }
 0x18f   : > { %415 = vadd.xlane.f32.xlu0 %v414_v2 }
 0x190   : > { %v411_v4 = vmul.f32 %v407_v1, %v407_v1  ;;  %v423_v8 = vsel %vm325_vm0, %v413_v7, 0.0 }
 0x192   : > { %v417_v6 = vsel %vm325_vm0, %v411_v4, 0.0 }
 0x193   : > { %421 = vadd.xlane.f32.xlu0 %v420_v5  ;;  %418 = vadd.xlane.f32.xlu1 %v417_v6 }
 0x197   : > { %424 = vadd.xlane.f32.xlu1 %v423_v8 }
 0x218   : > { %v416_v9 = vpop.xlane.xlu0 %415 }
 0x219   : > { %v426_v10 = vmul.f32 0.03125, %v416_v9 }
 0x21b   : > { %v430_v11 = vadd.f32 1e-05, %v426_v10 }
 0x21c   : > { %v419_v12 = vpop.xlane.xlu1 %418  ;;  %v422_v13 = vpop.xlane.xlu0 %421 }
 0x21d   : > { %594 = vrsqrt.f32 %v430_v11  ;;  %v427_v14 = vmul.f32 0.03125, %v419_v12  ;;  %v428_v15 = vmul.f32 0.03125, %v422_v13 }
 0x21f   : > { %v431_v16 = vadd.f32 1e-05, %v427_v14  ;;  %v432_v17 = vadd.f32 1e-05, %v428_v15 }
 0x220   : > { %v425_v18 = vpop.xlane.xlu1 %424 }
 0x221   : > { %596 = vrsqrt.f32 %v431_v16  ;;  %v429_v19 = vmul.f32 0.03125, %v425_v18 }
 0x222   : > { %598 = vrsqrt.f32 %v432_v17 }
 0x223   : > { %v433_v20 = vadd.f32 1e-05, %v429_v19 }
 0x225   : > { %600 = vrsqrt.f32 %v433_v20 }
 0x22a   : > { %v595_v21 = vpop.eup %594 }
 0x22b   : > { %v438_v23 = vmul.f32 %v595_v21, %v406_v59 }
 0x22d   : > { %v449_v25 = vmul.f32 %v554_v22, %v438_v23 }
 0x22e   : > { %v597_v26 = vpop.eup %596 }
 0x22f   : > { %v599_v27 = vpop.eup %598  ;;  %v460_v28 = vadd.f32 %v555_v24, %v449_v25  ;;  %v439_v29 = vmul.f32 %v597_v26, %v407_v1 }
 0x230   : > { %v440_v30 = vmul.f32 %v599_v27, %v408_v58 }
 0x231   : > { %464 = vst.msk [vmem:[%s275_s24] sm:$0xff] %vm325_vm0, %v460_v28  ;;  %v450_v31 = vmul.f32 %v554_v22, %v439_v29 }
 0x232   : > { %v601_v32 = vpop.eup %600  ;;  %v451_v33 = vmul.f32 %v554_v22, %v440_v30 }
 0x233   : > { %v461_v34 = vadd.f32 %v555_v24, %v450_v31  ;;  %v441_v35 = vmul.f32 %v601_v32, %v409_v0 }
 0x234   : > { %v462_v36 = vadd.f32 %v555_v24, %v451_v33 }
 0x235   : > { %465 = vst.msk [vmem:[%s275_s24 + $0x8] sm:$0xff] %vm325_vm0, %v461_v34  ;;  %v452_v37 = vmul.f32 %v554_v22, %v441_v35 }
 0x236   : > { %466 = vst.msk [vmem:[%s275_s24 + $0x10] sm:$0xff] %vm325_vm0, %v462_v36 }
 0x237   : > { %v463_v38 = vadd.f32 %v555_v24, %v452_v37 }
 0x239   : > { %467 = vst.msk [vmem:[%s275_s24 + $0x18] sm:$0xff] %vm325_vm0, %v463_v38 }
 0x23a PF: > { %s16_s21 = sadd.s32 1, %s608_s21  }
 0x23b   : > { %p13_p4 = scmp.ge.s32.totalorder %s16_s21, 4  }
 0x23d   :  { %15 = sbr.rel (!%p13_p4) target bundleno = 1 (0x1), region = 77 }

// kernel: _lambda_.11
= control target key start
LH: loop header
LB: loop body
LE: loop exit
PB: predicated region body
PF: predicated region fallthrough
CT: control target
= control target key end

     0   :  { %s750_s24 = smov 0   ;;  %s876_s0 = inlined_call_operand.vmem [shape: f32[64,32], index: 0, kind: input, shape index: {}]   ;;  %s877_s1 = inlined_call_operand.vmem [shape: f32[32,128], index: 1, kind: input, shape index: {}]   ;;  %s878_s2 = inlined_call_operand.vmem [shape: f32[1,128], index: 2, kind: input, shape index: {}]   ;;  %s879_s3 = inlined_call_operand.vmem [shape: f32[128,32], index: 3, kind: input, shape index: {}]   ;;  %s880_s4 = inlined_call_operand.vmem [shape: f32[1,32], index: 4, kind: input, shape index: {}]   ;;  %s881_s5 = inlined_call_operand.vmem [shape: f32[1,32], index: 5, kind: input, shape index: {}]   ;;  %s882_s6 = inlined_call_operand.vmem [shape: f32[1,32], index: 6, kind: input, shape index: {}]   ;;  %s883_s7 = inlined_call_operand.vmem [shape: f32[64,32], index: 7, kind: output, shape index: {}]  }
   0x1 LB: > { %s607_s25 = sadd.s32 4294967295, %s708_s24   ;;  %p611_p0 = scmp.ge.s32.totalorder %s708_s24, 1  ;;  %s708_s24 = sphi %s750_s24, %s17_s24  }
   0x2   : > { %p238_p1 = scmp.lt.s32.totalorder %s708_s24, 3 }
   0x4   : > { %p239_p2 = pnand %p611_p0, %p238_p1 }
   0x5   : > { %s612_s9 = sshll.u32 (!%p239_p2), %s607_s25, 2 }
   0x6   : > { %242 = sbr.rel (%p239_p2) target bundleno = 776 (0x308), region = 48  ;;  %p271_p3 = scmp.lt.s32.totalorder (!%p239_p2), %s612_s9, 7 }
   0xb   : > { %v291_v0 = vld [vmem:[%s877_s1 + $0x10] sm:$0xff]  ;;  %v292_v1 = vld [vmem:[%s877_s1 + $0x18] sm:$0xff]  ;;  %v289_v2 = vld [vmem:[%s877_s1] sm:$0xff]  ;;  %s885_s9 = smov (!%p271_p3, %s612_s9), 7  ;;  %vm302_vm0 = vcmask 261120  }
   0xc   : > { %v294_v3 = vpack.c.bf16 %v292_v1, %v291_v0  ;;  %v290_v4 = vld [vmem:[%s877_s1 + $0x8] sm:$0xff]  ;;  %s613_s12 = sshll.u32 %s885_s9, 3  ;;  %v402_v12 = vld [vmem:[%s879_s3 + $0x70] sm:$0xff]  ;;  %v403_v13 = vld [vmem:[%s879_s3 + $0x78] sm:$0xff] }
   0xd   : > { %v293_v5 = vpack.c.bf16 %v290_v4, %v289_v2  ;;  %s274_s15 = scalar_lea.vmem %s876_s0, %s613_s12  ;;  %v411_v14 = vpack.c.bf16 %v403_v13, %v402_v12  ;;  %v400_v15 = vld [vmem:[%s879_s3 + $0x60] sm:$0xff]  ;;  %v401_v16 = vld [vmem:[%s879_s3 + $0x68] sm:$0xff]  ;;  %v398_v18 = vld [vmem:[%s879_s3 + $0x50] sm:$0xff]  ;;  %s280_s18 = scalar_lea.vmem %s883_s7, %s613_s12 }
   0xe   : > { %642 = vmatprep.subr.bf16.mxu0 %v294_v3  ;;  %v778_v6 = vld [vmem:[%s274_s15] sm:$0xff]  ;;  %v780_v7 = vld [vmem:[%s274_s15 + $0x8] sm:$0xff]  ;;  %v782_v8 = vld [vmem:[%s274_s15 + $0x10] sm:$0xff]  ;;  %v410_v17 = vpack.c.bf16 %v401_v16, %v400_v15 }
   0xf   : > { %643 = vmatpush3.bf16.msra.mxu0 %v294_v3  ;;  %v287_v9 = vpack.c.bf16 %v780_v7, %v778_v6  ;;  %v786_v10 = vld [vmem:[%s274_s15 + $0x18] sm:$0xff]  ;;  %650 = vmatprep.subr.bf16.mxu1 %v411_v14  ;;  %v396_v21 = vld [vmem:[%s879_s3 + $0x40] sm:$0xff]  ;;  %v397_v22 = vld [vmem:[%s879_s3 + $0x48] sm:$0xff] }
  0x10   : > { %644 = vmatprep.subr.bf16.mxu0 %v293_v5  ;;  %v288_v11 = vpack.c.bf16 %v786_v10, %v782_v8  ;;  %651 = vmatpush3.bf16.msra.mxu1 %v411_v14  ;;  %v399_v19 = vld [vmem:[%s879_s3 + $0x58] sm:$0xff]  ;;  %v408_v23 = vpack.c.bf16 %v397_v22, %v396_v21  ;;  %v394_v24 = vld [vmem:[%s879_s3 + $0x30] sm:$0xff]  ;;  %v392_v27 = vld [vmem:[%s879_s3 + $0x20] sm:$0xff] }
  0x11   : > { %646 = vmatprep.mubr.msk.bf16.mxu0 %vm302_vm0, %v287_v9  ;;  %652 = vmatprep.subr.bf16.mxu1 %v410_v17  ;;  %v409_v20 = vpack.c.bf16 %v399_v19, %v398_v18  ;;  %v395_v25 = vld [vmem:[%s879_s3 + $0x38] sm:$0xff]  ;;  %v393_v28 = vld [vmem:[%s879_s3 + $0x28] sm:$0xff]  ;;  %v390_v30 = vld [vmem:[%s879_s3 + $0x10] sm:$0xff] }
  0x12   : > { %v407_v26 = vpack.c.bf16 %v395_v25, %v394_v24  ;;  %v406_v29 = vpack.c.bf16 %v393_v28, %v392_v27  ;;  %v391_v31 = vld [vmem:[%s879_s3 + $0x18] sm:$0xff]  ;;  %v388_v33 = vld [vmem:[%s879_s3] sm:$0xff]  ;;  %v389_v34 = vld [vmem:[%s879_s3 + $0x8] sm:$0xff] }
  0x13   : > { %645 = vmatpush3.bf16.msra.mxu0 %v293_v5  ;;  %v405_v32 = vpack.c.bf16 %v391_v31, %v390_v30  ;;  %v404_v35 = vpack.c.bf16 %v389_v34, %v388_v33  ;;  %v616_v36 = vld [vmem:[%s878_s2] ss:$0 sm:$0xff] }
  0x14   : > { %653 = vmatpush3.bf16.msra.mxu1 %v410_v17  ;;  %v623_v3 = vld [vmem:[%s880_s4] ss:$0 sm:$0xff] }
  0x15   : > { %654 = vmatprep.subr.bf16.mxu1 %v409_v20 }
  0x16   : > { %647 = vmatmul.mubr.msk.bf16.vlgmr.msra.gmra.mxu0 %vm302_vm0, %v288_v11 }
  0x18   : > { %655 = vmatpush3.bf16.msra.mxu1 %v409_v20 }
  0x19   : > { %656 = vmatprep.subr.bf16.mxu1 %v408_v23 }
  0x1c   : > { %657 = vmatpush3.bf16.msra.mxu1 %v408_v23 }
  0x1d   : > { %658 = vmatprep.subr.bf16.mxu1 %v407_v26 }
  0x20   : > { %659 = vmatpush3.bf16.msra.mxu1 %v407_v26 }
  0x21   : > { %660 = vmatprep.subr.bf16.mxu1 %v406_v29 }
  0x24   : > { %661 = vmatpush3.bf16.msra.mxu1 %v406_v29 }
  0x25   : > { %662 = vmatprep.subr.bf16.mxu1 %v405_v32 }
  0x28   : > { %663 = vmatpush3.bf16.msra.mxu1 %v405_v32 }
  0x29   : > { %664 = vmatprep.subr.bf16.mxu1 %v404_v35 }
  0x2c   : > { %665 = vmatpush3.bf16.msra.mxu1 %v404_v35 }
  0xd6   : > { %v648_v37 = vpop.f32.mrf.mxu0 }
  0xd7   : > { %v352_v38 = vadd.f32 %v648_v37, %v616_v36 }
  0xd8   : > { %v343_v39 = vpop.f32.mrf.mxu0 }
  0xd9   : > { %v621_v40 = vmul.f32 -1.442695, %v352_v38  ;;  %v344_v41 = vadd.f32 %v616_v36, %v343_v39 }
  0xda   : > { %v649_v42 = vpop.f32.mrf.mxu0 }
  0xdb   : > { %v619_v43 = vmul.f32 -1.442695, %v344_v41  ;;  %v355_v44 = vadd.f32 %v649_v42, %v616_v36  ;;  %678 = vpow2.f32 %v621_v40 }
  0xdc   : > { %v346_v45 = vpop.f32.mrf.mxu0 }
  0xdd   : > { %680 = vpow2.f32 %v619_v43  ;;  %v622_v46 = vmul.f32 -1.442695, %v355_v44  ;;  %v347_v47 = vadd.f32 %v616_v36, %v346_v45 }
  0xdf   : > { %682 = vpow2.f32 %v622_v46  ;;  %v620_v48 = vmul.f32 -1.442695, %v347_v47 }
  0xe1   : > { %684 = vpow2.f32 %v620_v48 }
  0xe8   : > { %v679_v49 = vpop.eup %678 }
  0xe9   : > { %v372_v53 = vadd.f32 1.0, %v679_v49 }
  0xea   : > { %v681_v50 = vpop.eup %680 }
  0xeb   : > { %v370_v51 = vadd.f32 1.0, %v681_v50 }
  0xec   : > { %v683_v52 = vpop.eup %682 }
  0xed   : > { %v373_v54 = vadd.f32 1.0, %v683_v52  ;;  %686 = vrcp.f32 %v370_v51 }
  0xee   : > { %v685_v55 = vpop.eup %684 }
  0xef   : > { %688 = vrcp.f32 %v373_v54  ;;  %v371_v56 = vadd.f32 1.0, %v685_v55  ;;  %v625_v55 = vld [vmem:[%s882_s6] ss:$0 sm:$0xff] }
  0xf0   : > { %690 = vrcp.f32 %v372_v53  ;;  %v624_v53 = vld [vmem:[%s881_s5] ss:$0 sm:$0xff] }
  0xf1   : > { %692 = vrcp.f32 %v371_v56 }
  0xfa   : > { %v687_v57 = vpop.eup %686 }
  0xfb   : > { %v382_v62 = vmul.f32 %v687_v57, %v344_v41 }
  0xfc   : > { %v689_v58 = vpop.eup %688 }
  0xfd   : > { %v691_v59 = vpop.eup %690  ;;  %v385_v61 = vmul.f32 %v689_v58, %v355_v44 }
  0xfe   : > { %v693_v60 = vpop.eup %692  ;;  %v384_v0 = vmul.f32 %v691_v59, %v352_v38 }
  0xff   : > { %v383_v63 = vmul.f32 %v693_v60, %v347_v47 }
 0x100   : > { %v387_v2 = vpack.c.bf16 %v385_v61, %v384_v0 }
 0x101   : > { %v386_v1 = vpack.c.bf16 %v383_v63, %v382_v62 }
 0x103   : > { %666 = vmatprep.mubr.bf16.mxu1 %v386_v1 }
 0x104   : > { %667 = vmatmul.mubr.bf16.vlgmr.msra.gmra.mxu1 %v387_v2 }
 0x1c4   : > { %v668_v4 = vpop.f32.mrf.mxu1 }
 0x1c5   : > { %v462_v5 = vadd.f32 %v668_v4, %v623_v3 }
 0x1c6   : > { %v453_v9 = vpop.f32.mrf.mxu1 }
 0x1c7   : > { %v454_v11 = vadd.f32 %v623_v3, %v453_v9  ;;  %v470_v12 = vadd.f32 %v462_v5, %v782_v8 }
 0x1c8   : > { %v669_v13 = vpop.f32.mrf.mxu1 }
 0x1c9   : > { %v465_v14 = vadd.f32 %v669_v13, %v623_v3  ;;  %v478_v15 = vsel %vm302_vm0, %v470_v12, 0.0  ;;  %v468_v16 = vadd.f32 %v454_v11, %v778_v6 }
 0x1ca   : > { %479 = vadd.xlane.f32.xlu1 %v478_v15  ;;  %v456_v17 = vpop.f32.mrf.mxu1 }
 0x1cb   : > { %v457_v18 = vadd.f32 %v623_v3, %v456_v17  ;;  %v472_v19 = vsel %vm302_vm0, %v468_v16, 0.0  ;;  %v471_v20 = vadd.f32 %v465_v14, %v786_v10 }
 0x1cc   : > { %473 = vadd.xlane.f32.xlu0 %v472_v19 }
 0x1cd   : > { %v481_v21 = vsel %vm302_vm0, %v471_v20, 0.0  ;;  %v469_v22 = vadd.f32 %v457_v18, %v780_v7 }
 0x1ce   : > { %482 = vadd.xlane.f32.xlu1 %v481_v21 }
 0x1cf   : > { %v475_v8 = vsel %vm302_vm0, %v469_v22, 0.0 }
 0x1d0   : > { %476 = vadd.xlane.f32.xlu0 %v475_v8 }
 0x253   : > { %v480_v23 = vpop.xlane.xlu1 %479 }
 0x254   : > { %v487_v24 = vmul.f32 0.03125, %v480_v23 }
 0x255   : > { %v474_v25 = vpop.xlane.xlu0 %473 }
 0x256   : > { %v485_v6 = vmul.f32 0.03125, %v474_v25  ;;  %v491_v27 = vsub.f32 %v470_v12, %v487_v24 }
 0x257   : > { %v483_v26 = vpop.xlane.xlu1 %482 }
 0x258   : > { %v489_v28 = vsub.f32 %v468_v16, %v485_v6  ;;  %v488_v29 = vmul.f32 0.03125, %v483_v26  ;;  %v495_v7 = vmul.f32 %v491_v27, %v491_v27 }
 0x259   : > { %v477_v30 = vpop.xlane.xlu0 %476 }
 0x25a   : > { %v486_v31 = vmul.f32 0.03125, %v477_v30  ;;  %v493_v10 = vmul.f32 %v489_v28, %v489_v28  ;;  %v492_v32 = vsub.f32 %v471_v20, %v488_v29  ;;  %v503_v36 = vsel %vm302_vm0, %v495_v7, 0.0 }
 0x25c   : > { %v490_v33 = vsub.f32 %v469_v22, %v486_v31  ;;  %v497_v34 = vsel %vm302_vm0, %v493_v10, 0.0  ;;  %v496_v38 = vmul.f32 %v492_v32, %v492_v32 }
 0x25d   : > { %498 = vadd.xlane.f32.xlu0 %v497_v34 }
 0x25e   : > { %v494_v35 = vmul.f32 %v490_v33, %v490_v33  ;;  %v506_v39 = vsel %vm302_vm0, %v496_v38, 0.0 }
 0x260   : > { %v500_v37 = vsel %vm302_vm0, %v494_v35, 0.0 }
 0x261   : > { %504 = vadd.xlane.f32.xlu0 %v503_v36  ;;  %501 = vadd.xlane.f32.xlu1 %v500_v37 }
 0x265   : > { %507 = vadd.xlane.f32.xlu1 %v506_v39 }
 0x2e6   : > { %v499_v40 = vpop.xlane.xlu0 %498 }
 0x2e7   : > { %v509_v41 = vmul.f32 0.03125, %v499_v40 }
 0x2e9   : > { %v513_v42 = vadd.f32 1e-05, %v509_v41 }
 0x2ea   : > { %v502_v43 = vpop.xlane.xlu1 %501  ;;  %v505_v44 = vpop.xlane.xlu0 %504 }
 0x2eb   : > { %694 = vrsqrt.f32 %v513_v42  ;;  %v510_v45 = vmul.f32 0.03125, %v502_v43  ;;  %v511_v46 = vmul.f32 0.03125, %v505_v44 }
 0x2ed   : > { %v514_v47 = vadd.f32 1e-05, %v510_v45  ;;  %v515_v48 = vadd.f32 1e-05, %v511_v46 }
 0x2ee   : > { %v508_v49 = vpop.xlane.xlu1 %507 }
 0x2ef   : > { %696 = vrsqrt.f32 %v514_v47  ;;  %v512_v50 = vmul.f32 0.03125, %v508_v49 }
 0x2f0   : > { %698 = vrsqrt.f32 %v515_v48 }
 0x2f1   : > { %v516_v51 = vadd.f32 1e-05, %v512_v50 }
 0x2f3   : > { %700 = vrsqrt.f32 %v516_v51 }
 0x2f8   : > { %v695_v52 = vpop.eup %694 }
 0x2f9   : > { %v521_v54 = vmul.f32 %v695_v52, %v489_v28 }
 0x2fb   : > { %v532_v56 = vmul.f32 %v624_v53, %v521_v54 }
 0x2fc   : > { %v697_v57 = vpop.eup %696 }
 0x2fd   : > { %v699_v58 = vpop.eup %698  ;;  %v543_v59 = vadd.f32 %v625_v55, %v532_v56  ;;  %v522_v60 = vmul.f32 %v697_v57, %v490_v33 }
 0x2fe   : > { %v523_v61 = vmul.f32 %v699_v58, %v491_v27 }
 0x2ff   : > { %547 = vst.msk [vmem:[%s280_s18] sm:$0xff] %vm302_vm0, %v543_v59  ;;  %v533_v62 = vmul.f32 %v624_v53, %v522_v60 }
 0x300   : > { %v701_v63 = vpop.eup %700  ;;  %v534_v0 = vmul.f32 %v624_v53, %v523_v61 }
 0x301   : > { %v544_v1 = vadd.f32 %v625_v55, %v533_v62  ;;  %v524_v2 = vmul.f32 %v701_v63, %v492_v32 }
 0x302   : > { %v545_v3 = vadd.f32 %v625_v55, %v534_v0 }
 0x303   : > { %548 = vst.msk [vmem:[%s280_s18 + $0x8] sm:$0xff] %vm302_vm0, %v544_v1  ;;  %v535_v4 = vmul.f32 %v624_v53, %v524_v2 }
 0x304   : > { %549 = vst.msk [vmem:[%s280_s18 + $0x10] sm:$0xff] %vm302_vm0, %v545_v3 }
 0x305   : > { %v546_v5 = vadd.f32 %v625_v55, %v535_v4 }
 0x307   : > { %550 = vst.msk [vmem:[%s280_s18 + $0x18] sm:$0xff] %vm302_vm0, %v546_v5 }
 0x308 PF: > { %s17_s24 = sadd.s32 1, %s708_s24  }
 0x309   : > { %p14_p4 = scmp.ge.s32.totalorder %s17_s24, 4  }
 0x30b   :  { %16 = sbr.rel (!%p14_p4) target bundleno = 1 (0x1), region = 78 }

// kernel: _lambda_.15
= control target key start
LH: loop header
LB: loop body
LE: loop exit
PB: predicated region body
PF: predicated region fallthrough
CT: control target
= control target key end

     0   :  { %12 = vsyncpa [#allocation3], 0  ;;  %s1063_s0 = inlined_call_operand.vmem [shape: f32[64,32], index: 0, kind: input, shape index: {}]   ;;  %s1064_s1 = inlined_call_operand.vmem [shape: f32[32,128], index: 1, kind: input, shape index: {}]   ;;  %s1065_s2 = inlined_call_operand.vmem [shape: f32[1,128], index: 2, kind: input, shape index: {}]   ;;  %s1066_s3 = inlined_call_operand.vmem [shape: f32[128,32], index: 3, kind: input, shape index: {}]   ;;  %s1067_s4 = inlined_call_operand.vmem [shape: f32[1,32], index: 4, kind: input, shape index: {}]   ;;  %s1068_s5 = inlined_call_operand.vmem [shape: f32[1,32], index: 5, kind: input, shape index: {}]   ;;  %s1069_s6 = inlined_call_operand.vmem [shape: f32[1,32], index: 6, kind: input, shape index: {}]   ;;  %s1070_s7 = inlined_call_operand.hbm [shape: f32[64,32], index: 7, kind: output, shape index: {}]  }
   0x1   :  { %14 = vsyncpa [#allocation3 + $0x1], 0  ;;  %s860_s24 = smov 0   ;;  %s862_s25 = smov 0  }
   0x2   :  { %s864_s26 = smov 0   ;;  %s866_s27 = smov 0  }
   0x3 LB: > { %s881_s28 = sadd.s32 4294967295, %s815_s27   ;;  %s625_s29 = sadd.s32 4294967294, %s815_s27   ;;  %s815_s27 = sphi %s866_s27, %s1076_s27   ;;  %s811_s26 = sphi %s864_s26, %s1075_s26   ;;  %s807_s25 = sphi %s862_s25, %s1074_s25   ;;  %s803_s24 = sphi %s860_s24, %s1073_s24  }
   0x4   : > { %s885_s30 = sadd.s32 1, %s815_s27   ;;  %s179_s8 = sadd.s32 1, %s811_s26 }
   0x5   : > { %s176_s9 = ssub.s32 %s815_s27, %s885_s30  ;;  %p189_p0 = scmp.ne.s32.totalorder %s811_s26, %s807_s25 }
   0x6   : > { %p177_p1 = scmp.eq.s32.totalorder %s176_s9, 0  ;;  %p190_p2 = scmp.eq.s32.totalorder %s881_s28, 1 }
   0x7   : > { %p195_p3 = scmp.ne.s32.totalorder %s807_s25, %s803_s24  ;;  %p196_p4 = scmp.eq.s32.totalorder %s625_s29, 1 }
   0x8   : > { %s896_s10 = scalar_select %p177_p1, %s811_s26, %s179_s8  }
   0x9   : > { %p898_p5 = por %p190_p2, %p189_p0  ;;  %p902_p6 = por %p196_p4, %p195_p3 }
   0xa   : > { %p628_p7 = scmp.ge.s32.totalorder %s815_s27, 1  ;;  %p241_p8 = scmp.lt.s32.totalorder %s815_s27, 3 }
   0xc   : > { %p242_p9 = pnand %p628_p7, %p241_p8 }
   0xd   : > { %s630_s19 = sshll.u32 (!%p242_p9), %s881_s28, 2  ;;  %s270_s20 = sand.u32 (!%p242_p9), 1, %s807_s25  }
   0xe   : > { %245 = sbr.rel (%p242_p9) target bundleno = 797 (0x31d), region = 48  ;;  %p274_p10 = scmp.lt.s32.totalorder (!%p242_p9), %s630_s19, 7 }
   0xf   : > { %s629_s23 = sshll.u32 (!%p242_p9), %s270_s20, 5  ;;  %s647_s13 = sshll.u32 (!%p242_p9), %s881_s28, 9 }
  0x10   : > { %s272_s9 = scalar_lea.vmem (!%p242_p9), [#allocation2], %s629_s23  ;;  %s1018_s17 = scalar_lea.hbm (!%p242_p9), %s1070_s7, %s647_s13 }
  0x11   : > { %s563_s14 = sshll.u32 (!%p242_p9), %s272_s9, 4  ;;  %s1023_s28 = scalar_lea.sflag (!%p242_p9), [#allocation3], %s270_s20  ;;  %s1020_s14 = int_to_ptr.vmem [resolvable:$true] %s563_s14 }
  0x12   : > { %s755_s18 = scalar_lea.vmem (!%p242_p9), %s1020_s14, 512 }
  0x13   : > { %v289_v0 = vld [vmem:[%s1064_s1 + $0x10] sm:$0xff]  ;;  %v290_v1 = vld [vmem:[%s1064_s1 + $0x18] sm:$0xff]  ;;  %v287_v2 = vld [vmem:[%s1064_s1] sm:$0xff]  ;;  %s1078_s19 = smov (!%p274_p10, %s630_s19), 7  ;;  %vm300_vm0 = vcmask 261120   ;;  %p756_p11 = scmp.ne.s32.totalorder %s1020_s14, %s755_s18 }
  0x14   : > { %v292_v3 = vpack.c.bf16 %v290_v1, %v289_v0  ;;  %v288_v4 = vld [vmem:[%s1064_s1 + $0x8] sm:$0xff]  ;;  %s631_s22 = sshll.u32 %s1078_s19, 3  ;;  %v400_v12 = vld [vmem:[%s1066_s3 + $0x70] sm:$0xff]  ;;  %v401_v13 = vld [vmem:[%s1066_s3 + $0x78] sm:$0xff]  ;;  %s817_s19 = smov [#allocation2]  }
  0x15   : > { %v291_v5 = vpack.c.bf16 %v288_v4, %v287_v2  ;;  %s277_s8 = scalar_lea.vmem %s1063_s0, %s631_s22  ;;  %v409_v14 = vpack.c.bf16 %v401_v13, %v400_v12  ;;  %v398_v15 = vld [vmem:[%s1066_s3 + $0x60] sm:$0xff]  ;;  %v399_v16 = vld [vmem:[%s1066_s3 + $0x68] sm:$0xff]  ;;  %v396_v18 = vld [vmem:[%s1066_s3 + $0x50] sm:$0xff]  ;;  %p757_p12 = pnand %p756_p11, %p898_p5 }
  0x16   : > { %662 = vmatprep.subr.bf16.mxu0 %v292_v3  ;;  %v924_v6 = vld [vmem:[%s277_s8] sm:$0xff]  ;;  %v926_v7 = vld [vmem:[%s277_s8 + $0x8] sm:$0xff]  ;;  %v928_v8 = vld [vmem:[%s277_s8 + $0x10] sm:$0xff]  ;;  %v408_v17 = vpack.c.bf16 %v399_v16, %v398_v15  ;;  %s759_s21 = sshll.u32 %s817_s19, 4  ;;  %s760_s21 = int_to_ptr.vmem [resolvable:$false] %s759_s21 }
  0x17   : > { %663 = vmatpush3.bf16.msra.mxu0 %v292_v3  ;;  %v285_v9 = vpack.c.bf16 %v926_v7, %v924_v6  ;;  %v932_v10 = vld [vmem:[%s277_s8 + $0x18] sm:$0xff]  ;;  %670 = vmatprep.subr.bf16.mxu1 %v409_v14  ;;  %v394_v21 = vld [vmem:[%s1066_s3 + $0x40] sm:$0xff]  ;;  %v395_v22 = vld [vmem:[%s1066_s3 + $0x48] sm:$0xff]  ;;  %p758_p13 = pneg %p757_p12  ;;  %s761_s22 = scalar_lea.vmem %s760_s21, 1024 }
  0x18   : > { %664 = vmatprep.subr.bf16.mxu0 %v291_v5  ;;  %v286_v11 = vpack.c.bf16 %v932_v10, %v928_v8  ;;  %671 = vmatpush3.bf16.msra.mxu1 %v409_v14  ;;  %v397_v19 = vld [vmem:[%s1066_s3 + $0x58] sm:$0xff]  ;;  %v406_v23 = vpack.c.bf16 %v395_v22, %v394_v21  ;;  %v392_v24 = vld [vmem:[%s1066_s3 + $0x30] sm:$0xff]  ;;  %v390_v27 = vld [vmem:[%s1066_s3 + $0x20] sm:$0xff]  ;;  %p762_p0 = scmp.lt.s32.totalorder %s1020_s14, %s760_s21  ;;  %p763_p1 = scmp.lt.s32.totalorder %s761_s22, %s755_s18 }
  0x19   : > { %666 = vmatprep.mubr.msk.bf16.mxu0 %vm300_vm0, %v285_v9  ;;  %672 = vmatprep.subr.bf16.mxu1 %v408_v17  ;;  %v407_v20 = vpack.c.bf16 %v397_v19, %v396_v18  ;;  %v393_v25 = vld [vmem:[%s1066_s3 + $0x38] sm:$0xff]  ;;  %v391_v28 = vld [vmem:[%s1066_s3 + $0x28] sm:$0xff]  ;;  %v388_v30 = vld [vmem:[%s1066_s3 + $0x10] sm:$0xff] }
  0x1a   : > { %v405_v26 = vpack.c.bf16 %v393_v25, %v392_v24  ;;  %v404_v29 = vpack.c.bf16 %v391_v28, %v390_v27  ;;  %v389_v31 = vld [vmem:[%s1066_s3 + $0x18] sm:$0xff]  ;;  %v386_v33 = vld [vmem:[%s1066_s3] sm:$0xff]  ;;  %v387_v34 = vld [vmem:[%s1066_s3 + $0x8] sm:$0xff]  ;;  %p764_p2 = por %p763_p1, %p762_p0 }
  0x1b   : > { %665 = vmatpush3.bf16.msra.mxu0 %v291_v5  ;;  %v403_v32 = vpack.c.bf16 %v389_v31, %v388_v30  ;;  %v402_v35 = vpack.c.bf16 %v387_v34, %v386_v33  ;;  %v632_v36 = vld [vmem:[%s1065_s2] ss:$0 sm:$0xff] }
  0x1c   : > { %673 = vmatpush3.bf16.msra.mxu1 %v408_v17  ;;  %v639_v3 = vld [vmem:[%s1067_s4] ss:$0 sm:$0xff]  ;;  %p765_p3 = pnand %p764_p2, %p758_p13 }
  0x1d   : > { %674 = vmatprep.subr.bf16.mxu1 %v407_v20 }
  0x1e   : > { %667 = vmatmul.mubr.msk.bf16.vlgmr.msra.gmra.mxu0 %vm300_vm0, %v286_v11 }
  0x20   : > { %675 = vmatpush3.bf16.msra.mxu1 %v407_v20 }
  0x21   : > { %676 = vmatprep.subr.bf16.mxu1 %v406_v23 }
  0x24   : > { %677 = vmatpush3.bf16.msra.mxu1 %v406_v23 }
  0x25   : > { %678 = vmatprep.subr.bf16.mxu1 %v405_v26 }
  0x28   : > { %679 = vmatpush3.bf16.msra.mxu1 %v405_v26 }
  0x29   : > { %680 = vmatprep.subr.bf16.mxu1 %v404_v29 }
  0x2c   : > { %681 = vmatpush3.bf16.msra.mxu1 %v404_v29 }
  0x2d   : > { %682 = vmatprep.subr.bf16.mxu1 %v403_v32 }
  0x30   : > { %683 = vmatpush3.bf16.msra.mxu1 %v403_v32 }
  0x31   : > { %684 = vmatprep.subr.bf16.mxu1 %v402_v35 }
  0x34   : > { %685 = vmatpush3.bf16.msra.mxu1 %v402_v35 }
  0xde   : > { %v668_v37 = vpop.f32.mrf.mxu0 }
  0xdf   : > { %v350_v38 = vadd.f32 %v668_v37, %v632_v36 }
  0xe0   : > { %v341_v39 = vpop.f32.mrf.mxu0 }
  0xe1   : > { %v637_v40 = vmul.f32 -1.442695, %v350_v38  ;;  %v342_v41 = vadd.f32 %v632_v36, %v341_v39 }
  0xe2   : > { %v669_v42 = vpop.f32.mrf.mxu0 }
  0xe3   : > { %v635_v43 = vmul.f32 -1.442695, %v342_v41  ;;  %v353_v44 = vadd.f32 %v669_v42, %v632_v36  ;;  %731 = vpow2.f32 %v637_v40 }
  0xe4   : > { %v344_v45 = vpop.f32.mrf.mxu0 }
  0xe5   : > { %733 = vpow2.f32 %v635_v43  ;;  %v638_v46 = vmul.f32 -1.442695, %v353_v44  ;;  %v345_v47 = vadd.f32 %v632_v36, %v344_v45 }
  0xe7   : > { %735 = vpow2.f32 %v638_v46  ;;  %v636_v48 = vmul.f32 -1.442695, %v345_v47 }
  0xe9   : > { %737 = vpow2.f32 %v636_v48 }
  0xf0   : > { %v732_v49 = vpop.eup %731 }
  0xf1   : > { %v370_v53 = vadd.f32 1.0, %v732_v49 }
  0xf2   : > { %v734_v50 = vpop.eup %733 }
  0xf3   : > { %v368_v51 = vadd.f32 1.0, %v734_v50 }
  0xf4   : > { %v736_v52 = vpop.eup %735 }
  0xf5   : > { %v371_v54 = vadd.f32 1.0, %v736_v52  ;;  %739 = vrcp.f32 %v368_v51 }
  0xf6   : > { %v738_v55 = vpop.eup %737 }
  0xf7   : > { %741 = vrcp.f32 %v371_v54  ;;  %v369_v56 = vadd.f32 1.0, %v738_v55  ;;  %v641_v55 = vld [vmem:[%s1069_s6] ss:$0 sm:$0xff] }
  0xf8   : > { %743 = vrcp.f32 %v370_v53  ;;  %v640_v53 = vld [vmem:[%s1068_s5] ss:$0 sm:$0xff] }
  0xf9   : > { %745 = vrcp.f32 %v369_v56 }
 0x102   : > { %v740_v57 = vpop.eup %739 }
 0x103   : > { %v380_v62 = vmul.f32 %v740_v57, %v342_v41 }
 0x104   : > { %v742_v58 = vpop.eup %741 }
 0x105   : > { %v744_v59 = vpop.eup %743  ;;  %v383_v61 = vmul.f32 %v742_v58, %v353_v44 }
 0x106   : > { %v746_v60 = vpop.eup %745  ;;  %v382_v0 = vmul.f32 %v744_v59, %v350_v38 }
 0x107   : > { %v381_v63 = vmul.f32 %v746_v60, %v345_v47 }
 0x108   : > { %v385_v2 = vpack.c.bf16 %v383_v61, %v382_v0 }
 0x109   : > { %v384_v1 = vpack.c.bf16 %v381_v63, %v380_v62 }
 0x10b   : > { %686 = vmatprep.mubr.bf16.mxu1 %v384_v1 }
 0x10c   : > { %687 = vmatmul.mubr.bf16.vlgmr.msra.gmra.mxu1 %v385_v2 }
 0x1cc   : > { %v688_v4 = vpop.f32.mrf.mxu1 }
 0x1cd   : > { %v460_v5 = vadd.f32 %v688_v4, %v639_v3 }
 0x1ce   : > { %v451_v9 = vpop.f32.mrf.mxu1 }
 0x1cf   : > { %v452_v11 = vadd.f32 %v639_v3, %v451_v9  ;;  %v468_v12 = vadd.f32 %v460_v5, %v928_v8 }
 0x1d0   : > { %v689_v13 = vpop.f32.mrf.mxu1 }
 0x1d1   : > { %v463_v14 = vadd.f32 %v689_v13, %v639_v3  ;;  %v476_v15 = vsel %vm300_vm0, %v468_v12, 0.0  ;;  %v466_v16 = vadd.f32 %v452_v11, %v924_v6 }
 0x1d2   : > { %477 = vadd.xlane.f32.xlu1 %v476_v15  ;;  %v454_v17 = vpop.f32.mrf.mxu1 }
 0x1d3   : > { %v455_v18 = vadd.f32 %v639_v3, %v454_v17  ;;  %v470_v19 = vsel %vm300_vm0, %v466_v16, 0.0  ;;  %v469_v20 = vadd.f32 %v463_v14, %v932_v10 }
 0x1d4   : > { %471 = vadd.xlane.f32.xlu0 %v470_v19 }
 0x1d5   : > { %v479_v21 = vsel %vm300_vm0, %v469_v20, 0.0  ;;  %v467_v22 = vadd.f32 %v455_v18, %v926_v7 }
 0x1d6   : > { %480 = vadd.xlane.f32.xlu1 %v479_v21 }
 0x1d7   : > { %v473_v8 = vsel %vm300_vm0, %v467_v22, 0.0 }
 0x1d8   : > { %474 = vadd.xlane.f32.xlu0 %v473_v8 }
 0x25b   : > { %v478_v23 = vpop.xlane.xlu1 %477 }
 0x25c   : > { %v485_v24 = vmul.f32 0.03125, %v478_v23 }
 0x25d   : > { %v472_v25 = vpop.xlane.xlu0 %471 }
 0x25e   : > { %v483_v6 = vmul.f32 0.03125, %v472_v25  ;;  %v489_v27 = vsub.f32 %v468_v12, %v485_v24 }
 0x25f   : > { %v481_v26 = vpop.xlane.xlu1 %480 }
 0x260   : > { %v487_v28 = vsub.f32 %v466_v16, %v483_v6  ;;  %v486_v29 = vmul.f32 0.03125, %v481_v26  ;;  %v493_v7 = vmul.f32 %v489_v27, %v489_v27 }
 0x261   : > { %v475_v30 = vpop.xlane.xlu0 %474 }
 0x262   : > { %v484_v31 = vmul.f32 0.03125, %v475_v30  ;;  %v491_v10 = vmul.f32 %v487_v28, %v487_v28  ;;  %v490_v32 = vsub.f32 %v469_v20, %v486_v29  ;;  %v501_v36 = vsel %vm300_vm0, %v493_v7, 0.0 }
 0x264   : > { %v488_v33 = vsub.f32 %v467_v22, %v484_v31  ;;  %v495_v34 = vsel %vm300_vm0, %v491_v10, 0.0  ;;  %v494_v38 = vmul.f32 %v490_v32, %v490_v32 }
 0x265   : > { %496 = vadd.xlane.f32.xlu0 %v495_v34 }
 0x266   : > { %v492_v35 = vmul.f32 %v488_v33, %v488_v33  ;;  %v504_v39 = vsel %vm300_vm0, %v494_v38, 0.0 }
 0x268   : > { %v498_v37 = vsel %vm300_vm0, %v492_v35, 0.0 }
 0x269   : > { %502 = vadd.xlane.f32.xlu0 %v501_v36  ;;  %499 = vadd.xlane.f32.xlu1 %v498_v37 }
 0x26d   : > { %505 = vadd.xlane.f32.xlu1 %v504_v39 }
 0x2ee   : > { %v497_v40 = vpop.xlane.xlu0 %496 }
 0x2ef   : > { %v507_v41 = vmul.f32 0.03125, %v497_v40 }
 0x2f1   : > { %v511_v42 = vadd.f32 1e-05, %v507_v41 }
 0x2f2   : > { %v500_v43 = vpop.xlane.xlu1 %499  ;;  %v503_v44 = vpop.xlane.xlu0 %502 }
 0x2f3   : > { %747 = vrsqrt.f32 %v511_v42  ;;  %v508_v45 = vmul.f32 0.03125, %v500_v43  ;;  %v509_v46 = vmul.f32 0.03125, %v503_v44 }
 0x2f5   : > { %v512_v47 = vadd.f32 1e-05, %v508_v45  ;;  %v513_v48 = vadd.f32 1e-05, %v509_v46 }
 0x2f6   : > { %v506_v49 = vpop.xlane.xlu1 %505 }
 0x2f7   : > { %749 = vrsqrt.f32 %v512_v47  ;;  %v510_v50 = vmul.f32 0.03125, %v506_v49 }
 0x2f8   : > { %751 = vrsqrt.f32 %v513_v48 }
 0x2f9   : > { %v514_v51 = vadd.f32 1e-05, %v510_v50 }
 0x2fb   : > { %753 = vrsqrt.f32 %v514_v51 }
 0x300   : > { %v748_v52 = vpop.eup %747 }
 0x301   : > { %v519_v54 = vmul.f32 %v748_v52, %v487_v28 }
 0x303   : > { %v530_v56 = vmul.f32 %v640_v53, %v519_v54 }
 0x304   : > { %v750_v57 = vpop.eup %749 }
 0x305   : > { %v752_v58 = vpop.eup %751  ;;  %v541_v59 = vadd.f32 %v641_v55, %v530_v56  ;;  %v520_v60 = vmul.f32 %v750_v57, %v488_v33 }
 0x306   : > { %v521_v61 = vmul.f32 %v752_v58, %v489_v27 }
 0x307   : > { %v531_v62 = vmul.f32 %v640_v53, %v520_v60  ;;  %545 = vst.msk [vmem:[%s272_s9] sm:$0xff] %vm300_vm0, %v541_v59 }
 0x308   : > { %v754_v63 = vpop.eup %753  ;;  %v532_v0 = vmul.f32 %v640_v53, %v521_v61 }
 0x309   : > { %v542_v1 = vadd.f32 %v641_v55, %v531_v62  ;;  %v522_v2 = vmul.f32 %v754_v63, %v490_v32 }
 0x30a   : > { %v543_v3 = vadd.f32 %v641_v55, %v532_v0 }
 0x30b   : > { %v533_v4 = vmul.f32 %v640_v53, %v522_v2  ;;  %546 = vst.msk [vmem:[%s272_s9 + $0x8] sm:$0xff] %vm300_vm0, %v542_v1 }
 0x30c   : > { %547 = vst.msk [vmem:[%s272_s9 + $0x10] sm:$0xff] %vm300_vm0, %v543_v3 }
 0x30d   : > { %v544_v5 = vadd.f32 %v641_v55, %v533_v4 }
 0x30f   : > { %548 = vst.msk [vmem:[%s272_s9 + $0x18] sm:$0xff] %vm300_vm0, %v544_v5 }
 0x310   : > { %768 = shalt.err (!%p765_p3)
}
 0x311   : > { %s769_s20 = scalar_lea.hbm %s1018_s17, 512  ;;  %s773_s8 = scalar_lea.hbm %s1070_s7, 1024 }
 0x312   : > { %p770_p4 = scmp.ne.s32.totalorder %s1018_s17, %s769_s20  ;;  %p774_p9 = scmp.lt.s32.totalorder %s1018_s17, %s1070_s7 }
 0x313   : > { %p775_p10 = scmp.lt.s32.totalorder %s773_s8, %s769_s20 }
 0x314   : > { %p771_p7 = pnand %p770_p4, %p898_p5 }
 0x315   : > { %p776_p11 = por %p775_p10, %p774_p9 }
 0x316   : > { %p772_p8 = pneg %p771_p7 }
 0x318   : > { %p777_p12 = pnand %p776_p11, %p772_p8 }
 0x31a   : > { %780 = shalt.err (!%p777_p12)
}
 0x31b   : > { %s818_s15 = smov 128   ;;  %s819_s16 = smov 8  }
 0x31c   : > { %690 = dma.vmem_to_hbm [thread:$0]  (%p898_p5), %s1020_s14, 512, %s1018_s17, %s1023_s28, %s818_s15, %s818_s15, %s819_s16  }
 0x31d PF: > { %p696_p13 = scmp.ge.s32.totalorder %s815_s27, 2  ;;  %s578_s18 = sand.u32 1, %s803_s24  }
 0x31e   : > { %s579_s19 = scalar_lea.sflag [#allocation3], %s578_s18 }
 0x31f   : > { %p693_p0 = pnand %p696_p13, %p902_p6 }
 0x321   : > { %p694_p1 = pneg %p693_p0 }
 0x323   : > { %798 = dma.done.wait (%p694_p1), %s579_s19, 512  }
 0x324   : > { %800 = vsyncadd (%p694_p1), %s579_s19, 4294966784  ;;  %p17_p2 = scmp.ge.s32.totalorder %s885_s30, 4   ;;  %s1073_s24 = smov %s807_s25 }
 0x325   : > { %s1074_s25 = smov %s811_s26  ;;  %s1075_s26 = smov %s896_s10 }
 0x326   : > { %s1076_s27 = smov %s885_s30  ;;  %19 = sbr.rel (!%p17_p2) target bundleno = 3 (0x3), region = 83 }
 0x32b   :  { %584 = vsyncpa [#allocation3], 1 }
 0x32c   :  { %586 = vsyncpa [#allocation3 + $0x1], 1 }

</bundles_post_ra>
